<compile_context>
chip_gen: v7x
topology: tpu7x:2x2x1
jax: 0.10.0
libtpu: 0.0.40
codegen_flags: <defaults>
</compile_context>

<pallas_src>
import functools

import jax
import jax.numpy as jnp
from jax.experimental import pallas as pl
from jax.experimental.pallas import tpu as pltpu


def _transformer5_kernel(
    x_ref,      # (B*S, D)
    wq_ref,     # (H, D, D_k)   per-head query projection
    wk_ref,     # (H, D, D_k)   per-head key projection
    wv_ref,     # (H, D, D_v)   per-head value projection
    wfc_ref,    # (H, D_v, D)   per-head slice of the output projection
    w1_ref,     # (D, D_inner)
    b1_ref,     # (1, D_inner)
    w2_ref,     # (D_inner, D)
    pd_ref,     # (5, D): rows = [ln1_g, ln1_b, mlp_b2, ln2_g, ln2_b]
    o_ref,      # (B*S, D)
    *,
    B, S, H, D_k,
):
    x = x_ref[...]                                   # (B*S, D) fp32
    pd = pd_ref[...]                                 # (5, D)
    inv_temp = 1.0 / (D_k ** 0.5)

    # ---- multi-head self-attention --------------------------------------
    # Heads are selected by indexing the leading axis of the pre-split
    # weights (no lane slicing); head outputs are accumulated through the
    # per-head fc slice (no concatenation).
    x_attn = None
    for h in range(H):                               # static, unrolled (H small)
        qh = jnp.dot(x, wq_ref[h], preferred_element_type=jnp.float32) * inv_temp
        kh = jnp.dot(x, wk_ref[h], preferred_element_type=jnp.float32)
        vh = jnp.dot(x, wv_ref[h], preferred_element_type=jnp.float32)
        qh = qh.reshape(B, S, D_k)                   # leading-dim split: free
        kh = kh.reshape(B, S, D_k)
        vh = vh.reshape(B, S, vh.shape[-1])

        # scores: contract last dims directly (no explicit kh.T transpose)
        s = jnp.einsum('bsd,btd->bst', qh, kh,
                       preferred_element_type=jnp.float32)        # (B, S, S)
        s = s - jnp.max(s, axis=-1, keepdims=True)   # stable softmax
        p = jnp.exp(s)
        denom = jnp.sum(p, axis=-1, keepdims=True)
        p = p * pl.reciprocal(denom, approx=True)    # EUP slot, frees VALU

        oh = jnp.einsum('bst,btd->bsd', p, vh,
                        preferred_element_type=jnp.float32)       # (B, S, D_v)
        oh = oh.reshape(B * S, oh.shape[-1])         # leading-dim merge: free

        contrib = jnp.dot(oh, wfc_ref[h], preferred_element_type=jnp.float32)
        x_attn = contrib if x_attn is None else x_attn + contrib

    x1 = x_attn + x                                  # residual

    # layer norm 1 (eps = 1e-6, biased variance; matches nn.LayerNorm(eps=1e-6))
    mean1 = jnp.mean(x1, axis=-1, keepdims=True)
    var1 = jnp.mean((x1 - mean1) ** 2, axis=-1, keepdims=True)
    xn = (x1 - mean1) * jax.lax.rsqrt(var1 + 1e-6)
    xn = xn * pd[0:1, :] + pd[1:2, :]

    # ---- MLP --------------------------------------------------------------
    h1 = jnp.dot(xn, w1_ref[...], preferred_element_type=jnp.float32) + b1_ref[...]
    h1 = jnp.maximum(h1, 0.0)                        # relu
    h2 = jnp.dot(h1, w2_ref[...], preferred_element_type=jnp.float32) + pd[2:3, :]
    y = h2 + xn                                      # residual

    # layer norm 2
    mean2 = jnp.mean(y, axis=-1, keepdims=True)
    var2 = jnp.mean((y - mean2) ** 2, axis=-1, keepdims=True)
    yn = (y - mean2) * jax.lax.rsqrt(var2 + 1e-6)
    o_ref[...] = yn * pd[3:4, :] + pd[4:5, :]


def transformer5_forward(x, params, *, H, D_k, D_v):
    """x: (B, S, D) float32. Returns (B, S, D) float32."""
    B, S, D = x.shape
    D_inner = params["w1"].shape[1]

    # Wrapper-side (XLA) weight re-arrangement: split heads along a leading
    # axis so the kernel never slices the lane dimension.
    wq_h = params["wq"].reshape(D, H, D_k).transpose(1, 0, 2)    # (H, D, D_k)
    wk_h = params["wk"].reshape(D, H, D_k).transpose(1, 0, 2)    # (H, D, D_k)
    wv_h = params["wv"].reshape(D, H, D_v).transpose(1, 0, 2)    # (H, D, D_v)
    wfc_h = params["wfc"].reshape(H, D_v, D)                     # (H, D_v, D)

    # Pack the five (1, D) vectors into a single array -> one DMA instead of 5.
    pd = jnp.concatenate(
        [params["ln1_g"], params["ln1_b"], params["b2"],
         params["ln2_g"], params["ln2_b"]], axis=0)              # (5, D)

    x_flat = x.reshape(B * S, D)

    kernel = functools.partial(_transformer5_kernel, B=B, S=S, H=H, D_k=D_k)

    def full(shape):
        return pl.BlockSpec(shape, lambda i: (0,) * len(shape))

    grid_spec = pltpu.PrefetchScalarGridSpec(
        num_scalar_prefetch=0,
        grid=(1,),                       # single step: whole problem in VMEM
        in_specs=[
            full((B * S, D)),            # x
            full((H, D, D_k)),           # wq (per head)
            full((H, D, D_k)),           # wk (per head)
            full((H, D, D_v)),           # wv (per head)
            full((H, D_v, D)),           # wfc (per head)
            full((D, D_inner)),          # w1
            full((1, D_inner)),          # b1
            full((D_inner, D)),          # w2
            full((5, D)),                # packed ln gammas/betas + mlp b2
        ],
        out_specs=full((B * S, D)),
    )

    out_flat = pl.pallas_call(
        kernel,
        out_shape=jax.ShapeDtypeStruct((B * S, D), jnp.float32),
        grid_spec=grid_spec,
        compiler_params=pltpu.CompilerParams(
            dimension_semantics=("arbitrary",)),
    )(x_flat, wq_h, wk_h, wv_h, wfc_h,
      params["w1"], params["b1"], params["w2"], pd)

    return out_flat.reshape(B, S, D)


def init_params(key, D, H, D_k, D_v, D_inner):
    ks = jax.random.split(key, 6)
    scale = 0.05
    return {
        "wq": scale * jax.random.normal(ks[0], (D, H * D_k), jnp.float32),
        "wk": scale * jax.random.normal(ks[1], (D, H * D_k), jnp.float32),
        "wv": scale * jax.random.normal(ks[2], (D, H * D_v), jnp.float32),
        "wfc": scale * jax.random.normal(ks[3], (H * D_v, D), jnp.float32),
        "ln1_g": jnp.ones((1, D), jnp.float32),
        "ln1_b": jnp.zeros((1, D), jnp.float32),
        "w1": scale * jax.random.normal(ks[4], (D, D_inner), jnp.float32),
        "b1": jnp.zeros((1, D_inner), jnp.float32),
        "w2": scale * jax.random.normal(ks[5], (D_inner, D), jnp.float32),
        "b2": jnp.zeros((1, D), jnp.float32),
        "ln2_g": jnp.ones((1, D), jnp.float32),
        "ln2_b": jnp.zeros((1, D), jnp.float32),
    }


if __name__ == "__main__":
    # Shapes consistent with Transformer5(H=4, D=32, D_k=8, D_v=8, D_inner=64)
    B, S, D = 2, 8, 32
    H, D_k, D_v, D_inner = 4, 8, 8, 64

    key = jax.random.PRNGKey(0)
    k_x, k_p = jax.random.split(key)
    x = jax.random.normal(k_x, (B, S, D), jnp.float32)
    params = init_params(k_p, D, H, D_k, D_v, D_inner)

    out = transformer5_forward(x, params, H=H, D_k=D_k, D_v=D_v)
    jax.block_until_ready(out)
    assert out.shape == (B, S, D)
    print("KERNEL_OK")
</pallas_src>

<mosaic_0001>
module attributes {stable_mosaic.version = 11 : i64} {
  func.func @_transformer5_kernel(%arg0: i32, %arg1: memref<16x32xf32, #tpu.memory_space<vmem>>, %arg2: memref<4x32x8xf32, #tpu.memory_space<vmem>>, %arg3: memref<4x32x8xf32, #tpu.memory_space<vmem>>, %arg4: memref<4x32x8xf32, #tpu.memory_space<vmem>>, %arg5: memref<4x8x32xf32, #tpu.memory_space<vmem>>, %arg6: memref<32x64xf32, #tpu.memory_space<vmem>>, %arg7: memref<1x64xf32, #tpu.memory_space<vmem>>, %arg8: memref<64x32xf32, #tpu.memory_space<vmem>>, %arg9: memref<5x32xf32, #tpu.memory_space<vmem>>, %arg10: memref<16x32xf32, #tpu.memory_space<vmem>>) attributes {dimension_semantics = [#tpu.dimension_semantics<arbitrary>], iteration_bounds = array<i64: 1>, scalar_prefetch = 0 : i64, scratch_operands = 0 : i64, tpu.core_type = #tpu.core_type<tc>, window_params = [{pipeline_mode = #tpu.pipeline_mode<synchronous>, transform_indices = @transform_0, window_bounds = array<i64: 16, 32>}, {pipeline_mode = #tpu.pipeline_mode<synchronous>, transform_indices = @transform_1, window_bounds = array<i64: 4, 32, 8>}, {pipeline_mode = #tpu.pipeline_mode<synchronous>, transform_indices = @transform_2, window_bounds = array<i64: 4, 32, 8>}, {pipeline_mode = #tpu.pipeline_mode<synchronous>, transform_indices = @transform_3, window_bounds = array<i64: 4, 32, 8>}, {pipeline_mode = #tpu.pipeline_mode<synchronous>, transform_indices = @transform_4, window_bounds = array<i64: 4, 8, 32>}, {pipeline_mode = #tpu.pipeline_mode<synchronous>, transform_indices = @transform_5, window_bounds = array<i64: 32, 64>}, {pipeline_mode = #tpu.pipeline_mode<synchronous>, transform_indices = @transform_6, window_bounds = array<i64: 1, 64>}, {pipeline_mode = #tpu.pipeline_mode<synchronous>, transform_indices = @transform_7, window_bounds = array<i64: 64, 32>}, {pipeline_mode = #tpu.pipeline_mode<synchronous>, transform_indices = @transform_8, window_bounds = array<i64: 5, 32>}, {pipeline_mode = #tpu.pipeline_mode<synchronous>, transform_indices = @transform_9, window_bounds = array<i64: 16, 32>}]} {
    %c0 = arith.constant 0 : index
    %c0_0 = arith.constant 0 : index
    %0 = vector.load %arg1[%c0, %c0_0] : memref<16x32xf32, #tpu.memory_space<vmem>>, vector<16x32xf32>
    %c0_1 = arith.constant 0 : index
    %c0_2 = arith.constant 0 : index
    %1 = vector.load %arg9[%c0_1, %c0_2] : memref<5x32xf32, #tpu.memory_space<vmem>>, vector<5x32xf32>
    %c0_3 = arith.constant 0 : index
    %c0_4 = arith.constant 0 : index
    %c0_5 = arith.constant 0 : index
    %2 = vector.load %arg2[%c0_3, %c0_4, %c0_5] : memref<4x32x8xf32, #tpu.memory_space<vmem>>, vector<1x32x8xf32>
    %3 = vector.shape_cast %2 : vector<1x32x8xf32> to vector<32x8xf32>
    %cst = arith.constant dense<0.000000e+00> : vector<16x8xf32>
    %4 = tpu.matmul %0, %3, %cst {dimension_numbers = #tpu.dot_dimension_numbers<[1], [0], [0], [1], [0, 0, 1, 1], [], []>} : vector<16x32xf32>, vector<32x8xf32>, vector<16x8xf32> -> vector<16x8xf32>
    %cst_6 = arith.constant 0.353553385 : f32
    %5 = vector.broadcast %cst_6 : f32 to vector<16x8xf32>
    %6 = arith.mulf %4, %5 : vector<16x8xf32>
    %c0_7 = arith.constant 0 : index
    %c0_8 = arith.constant 0 : index
    %c0_9 = arith.constant 0 : index
    %7 = vector.load %arg3[%c0_7, %c0_8, %c0_9] : memref<4x32x8xf32, #tpu.memory_space<vmem>>, vector<1x32x8xf32>
    %8 = vector.shape_cast %7 : vector<1x32x8xf32> to vector<32x8xf32>
    %cst_10 = arith.constant dense<0.000000e+00> : vector<16x8xf32>
    %9 = tpu.matmul %0, %8, %cst_10 {dimension_numbers = #tpu.dot_dimension_numbers<[1], [0], [0], [1], [0, 0, 1, 1], [], []>} : vector<16x32xf32>, vector<32x8xf32>, vector<16x8xf32> -> vector<16x8xf32>
    %c0_11 = arith.constant 0 : index
    %c0_12 = arith.constant 0 : index
    %c0_13 = arith.constant 0 : index
    %10 = vector.load %arg4[%c0_11, %c0_12, %c0_13] : memref<4x32x8xf32, #tpu.memory_space<vmem>>, vector<1x32x8xf32>
    %11 = vector.shape_cast %10 : vector<1x32x8xf32> to vector<32x8xf32>
    %cst_14 = arith.constant dense<0.000000e+00> : vector<16x8xf32>
    %12 = tpu.matmul %0, %11, %cst_14 {dimension_numbers = #tpu.dot_dimension_numbers<[1], [0], [0], [1], [0, 0, 1, 1], [], []>} : vector<16x32xf32>, vector<32x8xf32>, vector<16x8xf32> -> vector<16x8xf32>
    %13 = vector.shape_cast %6 : vector<16x8xf32> to vector<2x8x8xf32>
    %14 = vector.shape_cast %9 : vector<16x8xf32> to vector<2x8x8xf32>
    %15 = vector.shape_cast %12 : vector<16x8xf32> to vector<2x8x8xf32>
    "tpu.trace_start"() <{level = 10 : i32, message = "bsd,btd->bst"}> : () -> ()
    %cst_15 = arith.constant dense<0.000000e+00> : vector<2x8x8xf32>
    %16 = tpu.matmul %13, %14, %cst_15 {dimension_numbers = #tpu.dot_dimension_numbers<[2], [2], [1], [1], [0, 0, 0, 1, 1, 1], [0], [0]>} : vector<2x8x8xf32>, vector<2x8x8xf32>, vector<2x8x8xf32> -> vector<2x8x8xf32>
    "tpu.trace_stop"() : () -> ()
    %cst_16 = arith.constant dense<0xFF800000> : vector<2x8xf32>
    %17 = vector.multi_reduction <maximumf>, %16, %cst_16 [2] : vector<2x8x8xf32> to vector<2x8xf32>
    %18 = vector.shape_cast %17 : vector<2x8xf32> to vector<2x8x1xf32>
    %19 = vector.broadcast %18 : vector<2x8x1xf32> to vector<2x8x8xf32>
    %20 = arith.subf %16, %19 : vector<2x8x8xf32>
    %21 = math.exp %20 : vector<2x8x8xf32>
    %cst_17 = arith.constant dense<0.000000e+00> : vector<2x8xf32>
    %22 = vector.multi_reduction <add>, %21, %cst_17 [2] : vector<2x8x8xf32> to vector<2x8xf32>
    %23 = vector.shape_cast %22 : vector<2x8xf32> to vector<2x8x1xf32>
    %24 = tpu.reciprocal %23 {approx = true} : vector<2x8x1xf32> -> vector<2x8x1xf32>
    %25 = vector.broadcast %24 : vector<2x8x1xf32> to vector<2x8x8xf32>
    %26 = arith.mulf %21, %25 : vector<2x8x8xf32>
    "tpu.trace_start"() <{level = 10 : i32, message = "bst,btd->bsd"}> : () -> ()
    %cst_18 = arith.constant dense<0.000000e+00> : vector<2x8x8xf32>
    %27 = tpu.matmul %26, %15, %cst_18 {dimension_numbers = #tpu.dot_dimension_numbers<[2], [1], [1], [2], [0, 0, 0, 1, 1, 2], [0], [0]>} : vector<2x8x8xf32>, vector<2x8x8xf32>, vector<2x8x8xf32> -> vector<2x8x8xf32>
    "tpu.trace_stop"() : () -> ()
    %28 = vector.shape_cast %27 : vector<2x8x8xf32> to vector<16x8xf32>
    %c0_19 = arith.constant 0 : index
    %c0_20 = arith.constant 0 : index
    %c0_21 = arith.constant 0 : index
    %29 = vector.load %arg5[%c0_19, %c0_20, %c0_21] : memref<4x8x32xf32, #tpu.memory_space<vmem>>, vector<1x8x32xf32>
    %30 = vector.shape_cast %29 : vector<1x8x32xf32> to vector<8x32xf32>
    %cst_22 = arith.constant dense<0.000000e+00> : vector<16x32xf32>
    %31 = tpu.matmul %28, %30, %cst_22 {dimension_numbers = #tpu.dot_dimension_numbers<[1], [0], [0], [1], [0, 0, 1, 1], [], []>} : vector<16x8xf32>, vector<8x32xf32>, vector<16x32xf32> -> vector<16x32xf32>
    %c1 = arith.constant 1 : index
    %c0_23 = arith.constant 0 : index
    %c0_24 = arith.constant 0 : index
    %32 = vector.load %arg2[%c1, %c0_23, %c0_24] : memref<4x32x8xf32, #tpu.memory_space<vmem>>, vector<1x32x8xf32>
    %33 = vector.shape_cast %32 : vector<1x32x8xf32> to vector<32x8xf32>
    %cst_25 = arith.constant dense<0.000000e+00> : vector<16x8xf32>
    %34 = tpu.matmul %0, %33, %cst_25 {dimension_numbers = #tpu.dot_dimension_numbers<[1], [0], [0], [1], [0, 0, 1, 1], [], []>} : vector<16x32xf32>, vector<32x8xf32>, vector<16x8xf32> -> vector<16x8xf32>
    %cst_26 = arith.constant 0.353553385 : f32
    %35 = vector.broadcast %cst_26 : f32 to vector<16x8xf32>
    %36 = arith.mulf %34, %35 : vector<16x8xf32>
    %c1_27 = arith.constant 1 : index
    %c0_28 = arith.constant 0 : index
    %c0_29 = arith.constant 0 : index
    %37 = vector.load %arg3[%c1_27, %c0_28, %c0_29] : memref<4x32x8xf32, #tpu.memory_space<vmem>>, vector<1x32x8xf32>
    %38 = vector.shape_cast %37 : vector<1x32x8xf32> to vector<32x8xf32>
    %cst_30 = arith.constant dense<0.000000e+00> : vector<16x8xf32>
    %39 = tpu.matmul %0, %38, %cst_30 {dimension_numbers = #tpu.dot_dimension_numbers<[1], [0], [0], [1], [0, 0, 1, 1], [], []>} : vector<16x32xf32>, vector<32x8xf32>, vector<16x8xf32> -> vector<16x8xf32>
    %c1_31 = arith.constant 1 : index
    %c0_32 = arith.constant 0 : index
    %c0_33 = arith.constant 0 : index
    %40 = vector.load %arg4[%c1_31, %c0_32, %c0_33] : memref<4x32x8xf32, #tpu.memory_space<vmem>>, vector<1x32x8xf32>
    %41 = vector.shape_cast %40 : vector<1x32x8xf32> to vector<32x8xf32>
    %cst_34 = arith.constant dense<0.000000e+00> : vector<16x8xf32>
    %42 = tpu.matmul %0, %41, %cst_34 {dimension_numbers = #tpu.dot_dimension_numbers<[1], [0], [0], [1], [0, 0, 1, 1], [], []>} : vector<16x32xf32>, vector<32x8xf32>, vector<16x8xf32> -> vector<16x8xf32>
    %43 = vector.shape_cast %36 : vector<16x8xf32> to vector<2x8x8xf32>
    %44 = vector.shape_cast %39 : vector<16x8xf32> to vector<2x8x8xf32>
    %45 = vector.shape_cast %42 : vector<16x8xf32> to vector<2x8x8xf32>
    "tpu.trace_start"() <{level = 10 : i32, message = "bsd,btd->bst"}> : () -> ()
    %cst_35 = arith.constant dense<0.000000e+00> : vector<2x8x8xf32>
    %46 = tpu.matmul %43, %44, %cst_35 {dimension_numbers = #tpu.dot_dimension_numbers<[2], [2], [1], [1], [0, 0, 0, 1, 1, 1], [0], [0]>} : vector<2x8x8xf32>, vector<2x8x8xf32>, vector<2x8x8xf32> -> vector<2x8x8xf32>
    "tpu.trace_stop"() : () -> ()
    %cst_36 = arith.constant dense<0xFF800000> : vector<2x8xf32>
    %47 = vector.multi_reduction <maximumf>, %46, %cst_36 [2] : vector<2x8x8xf32> to vector<2x8xf32>
    %48 = vector.shape_cast %47 : vector<2x8xf32> to vector<2x8x1xf32>
    %49 = vector.broadcast %48 : vector<2x8x1xf32> to vector<2x8x8xf32>
    %50 = arith.subf %46, %49 : vector<2x8x8xf32>
    %51 = math.exp %50 : vector<2x8x8xf32>
    %cst_37 = arith.constant dense<0.000000e+00> : vector<2x8xf32>
    %52 = vector.multi_reduction <add>, %51, %cst_37 [2] : vector<2x8x8xf32> to vector<2x8xf32>
    %53 = vector.shape_cast %52 : vector<2x8xf32> to vector<2x8x1xf32>
    %54 = tpu.reciprocal %53 {approx = true} : vector<2x8x1xf32> -> vector<2x8x1xf32>
    %55 = vector.broadcast %54 : vector<2x8x1xf32> to vector<2x8x8xf32>
    %56 = arith.mulf %51, %55 : vector<2x8x8xf32>
    "tpu.trace_start"() <{level = 10 : i32, message = "bst,btd->bsd"}> : () -> ()
    %cst_38 = arith.constant dense<0.000000e+00> : vector<2x8x8xf32>
    %57 = tpu.matmul %56, %45, %cst_38 {dimension_numbers = #tpu.dot_dimension_numbers<[2], [1], [1], [2], [0, 0, 0, 1, 1, 2], [0], [0]>} : vector<2x8x8xf32>, vector<2x8x8xf32>, vector<2x8x8xf32> -> vector<2x8x8xf32>
    "tpu.trace_stop"() : () -> ()
    %58 = vector.shape_cast %57 : vector<2x8x8xf32> to vector<16x8xf32>
    %c1_39 = arith.constant 1 : index
    %c0_40 = arith.constant 0 : index
    %c0_41 = arith.constant 0 : index
    %59 = vector.load %arg5[%c1_39, %c0_40, %c0_41] : memref<4x8x32xf32, #tpu.memory_space<vmem>>, vector<1x8x32xf32>
    %60 = vector.shape_cast %59 : vector<1x8x32xf32> to vector<8x32xf32>
    %cst_42 = arith.constant dense<0.000000e+00> : vector<16x32xf32>
    %61 = tpu.matmul %58, %60, %cst_42 {dimension_numbers = #tpu.dot_dimension_numbers<[1], [0], [0], [1], [0, 0, 1, 1], [], []>} : vector<16x8xf32>, vector<8x32xf32>, vector<16x32xf32> -> vector<16x32xf32>
    %62 = arith.addf %31, %61 : vector<16x32xf32>
    %c2 = arith.constant 2 : index
    %c0_43 = arith.constant 0 : index
    %c0_44 = arith.constant 0 : index
    %63 = vector.load %arg2[%c2, %c0_43, %c0_44] : memref<4x32x8xf32, #tpu.memory_space<vmem>>, vector<1x32x8xf32>
    %64 = vector.shape_cast %63 : vector<1x32x8xf32> to vector<32x8xf32>
    %cst_45 = arith.constant dense<0.000000e+00> : vector<16x8xf32>
    %65 = tpu.matmul %0, %64, %cst_45 {dimension_numbers = #tpu.dot_dimension_numbers<[1], [0], [0], [1], [0, 0, 1, 1], [], []>} : vector<16x32xf32>, vector<32x8xf32>, vector<16x8xf32> -> vector<16x8xf32>
    %cst_46 = arith.constant 0.353553385 : f32
    %66 = vector.broadcast %cst_46 : f32 to vector<16x8xf32>
    %67 = arith.mulf %65, %66 : vector<16x8xf32>
    %c2_47 = arith.constant 2 : index
    %c0_48 = arith.constant 0 : index
    %c0_49 = arith.constant 0 : index
    %68 = vector.load %arg3[%c2_47, %c0_48, %c0_49] : memref<4x32x8xf32, #tpu.memory_space<vmem>>, vector<1x32x8xf32>
    %69 = vector.shape_cast %68 : vector<1x32x8xf32> to vector<32x8xf32>
    %cst_50 = arith.constant dense<0.000000e+00> : vector<16x8xf32>
    %70 = tpu.matmul %0, %69, %cst_50 {dimension_numbers = #tpu.dot_dimension_numbers<[1], [0], [0], [1], [0, 0, 1, 1], [], []>} : vector<16x32xf32>, vector<32x8xf32>, vector<16x8xf32> -> vector<16x8xf32>
    %c2_51 = arith.constant 2 : index
    %c0_52 = arith.constant 0 : index
    %c0_53 = arith.constant 0 : index
    %71 = vector.load %arg4[%c2_51, %c0_52, %c0_53] : memref<4x32x8xf32, #tpu.memory_space<vmem>>, vector<1x32x8xf32>
    %72 = vector.shape_cast %71 : vector<1x32x8xf32> to vector<32x8xf32>
    %cst_54 = arith.constant dense<0.000000e+00> : vector<16x8xf32>
    %73 = tpu.matmul %0, %72, %cst_54 {dimension_numbers = #tpu.dot_dimension_numbers<[1], [0], [0], [1], [0, 0, 1, 1], [], []>} : vector<16x32xf32>, vector<32x8xf32>, vector<16x8xf32> -> vector<16x8xf32>
    %74 = vector.shape_cast %67 : vector<16x8xf32> to vector<2x8x8xf32>
    %75 = vector.shape_cast %70 : vector<16x8xf32> to vector<2x8x8xf32>
    %76 = vector.shape_cast %73 : vector<16x8xf32> to vector<2x8x8xf32>
    "tpu.trace_start"() <{level = 10 : i32, message = "bsd,btd->bst"}> : () -> ()
    %cst_55 = arith.constant dense<0.000000e+00> : vector<2x8x8xf32>
    %77 = tpu.matmul %74, %75, %cst_55 {dimension_numbers = #tpu.dot_dimension_numbers<[2], [2], [1], [1], [0, 0, 0, 1, 1, 1], [0], [0]>} : vector<2x8x8xf32>, vector<2x8x8xf32>, vector<2x8x8xf32> -> vector<2x8x8xf32>
    "tpu.trace_stop"() : () -> ()
    %cst_56 = arith.constant dense<0xFF800000> : vector<2x8xf32>
    %78 = vector.multi_reduction <maximumf>, %77, %cst_56 [2] : vector<2x8x8xf32> to vector<2x8xf32>
    %79 = vector.shape_cast %78 : vector<2x8xf32> to vector<2x8x1xf32>
    %80 = vector.broadcast %79 : vector<2x8x1xf32> to vector<2x8x8xf32>
    %81 = arith.subf %77, %80 : vector<2x8x8xf32>
    %82 = math.exp %81 : vector<2x8x8xf32>
    %cst_57 = arith.constant dense<0.000000e+00> : vector<2x8xf32>
    %83 = vector.multi_reduction <add>, %82, %cst_57 [2] : vector<2x8x8xf32> to vector<2x8xf32>
    %84 = vector.shape_cast %83 : vector<2x8xf32> to vector<2x8x1xf32>
    %85 = tpu.reciprocal %84 {approx = true} : vector<2x8x1xf32> -> vector<2x8x1xf32>
    %86 = vector.broadcast %85 : vector<2x8x1xf32> to vector<2x8x8xf32>
    %87 = arith.mulf %82, %86 : vector<2x8x8xf32>
    "tpu.trace_start"() <{level = 10 : i32, message = "bst,btd->bsd"}> : () -> ()
    %cst_58 = arith.constant dense<0.000000e+00> : vector<2x8x8xf32>
    %88 = tpu.matmul %87, %76, %cst_58 {dimension_numbers = #tpu.dot_dimension_numbers<[2], [1], [1], [2], [0, 0, 0, 1, 1, 2], [0], [0]>} : vector<2x8x8xf32>, vector<2x8x8xf32>, vector<2x8x8xf32> -> vector<2x8x8xf32>
    "tpu.trace_stop"() : () -> ()
    %89 = vector.shape_cast %88 : vector<2x8x8xf32> to vector<16x8xf32>
    %c2_59 = arith.constant 2 : index
    %c0_60 = arith.constant 0 : index
    %c0_61 = arith.constant 0 : index
    %90 = vector.load %arg5[%c2_59, %c0_60, %c0_61] : memref<4x8x32xf32, #tpu.memory_space<vmem>>, vector<1x8x32xf32>
    %91 = vector.shape_cast %90 : vector<1x8x32xf32> to vector<8x32xf32>
    %cst_62 = arith.constant dense<0.000000e+00> : vector<16x32xf32>
    %92 = tpu.matmul %89, %91, %cst_62 {dimension_numbers = #tpu.dot_dimension_numbers<[1], [0], [0], [1], [0, 0, 1, 1], [], []>} : vector<16x8xf32>, vector<8x32xf32>, vector<16x32xf32> -> vector<16x32xf32>
    %93 = arith.addf %62, %92 : vector<16x32xf32>
    %c3 = arith.constant 3 : index
    %c0_63 = arith.constant 0 : index
    %c0_64 = arith.constant 0 : index
    %94 = vector.load %arg2[%c3, %c0_63, %c0_64] : memref<4x32x8xf32, #tpu.memory_space<vmem>>, vector<1x32x8xf32>
    %95 = vector.shape_cast %94 : vector<1x32x8xf32> to vector<32x8xf32>
    %cst_65 = arith.constant dense<0.000000e+00> : vector<16x8xf32>
    %96 = tpu.matmul %0, %95, %cst_65 {dimension_numbers = #tpu.dot_dimension_numbers<[1], [0], [0], [1], [0, 0, 1, 1], [], []>} : vector<16x32xf32>, vector<32x8xf32>, vector<16x8xf32> -> vector<16x8xf32>
    %cst_66 = arith.constant 0.353553385 : f32
    %97 = vector.broadcast %cst_66 : f32 to vector<16x8xf32>
    %98 = arith.mulf %96, %97 : vector<16x8xf32>
    %c3_67 = arith.constant 3 : index
    %c0_68 = arith.constant 0 : index
    %c0_69 = arith.constant 0 : index
    %99 = vector.load %arg3[%c3_67, %c0_68, %c0_69] : memref<4x32x8xf32, #tpu.memory_space<vmem>>, vector<1x32x8xf32>
    %100 = vector.shape_cast %99 : vector<1x32x8xf32> to vector<32x8xf32>
    %cst_70 = arith.constant dense<0.000000e+00> : vector<16x8xf32>
    %101 = tpu.matmul %0, %100, %cst_70 {dimension_numbers = #tpu.dot_dimension_numbers<[1], [0], [0], [1], [0, 0, 1, 1], [], []>} : vector<16x32xf32>, vector<32x8xf32>, vector<16x8xf32> -> vector<16x8xf32>
    %c3_71 = arith.constant 3 : index
    %c0_72 = arith.constant 0 : index
    %c0_73 = arith.constant 0 : index
    %102 = vector.load %arg4[%c3_71, %c0_72, %c0_73] : memref<4x32x8xf32, #tpu.memory_space<vmem>>, vector<1x32x8xf32>
    %103 = vector.shape_cast %102 : vector<1x32x8xf32> to vector<32x8xf32>
    %cst_74 = arith.constant dense<0.000000e+00> : vector<16x8xf32>
    %104 = tpu.matmul %0, %103, %cst_74 {dimension_numbers = #tpu.dot_dimension_numbers<[1], [0], [0], [1], [0, 0, 1, 1], [], []>} : vector<16x32xf32>, vector<32x8xf32>, vector<16x8xf32> -> vector<16x8xf32>
    %105 = vector.shape_cast %98 : vector<16x8xf32> to vector<2x8x8xf32>
    %106 = vector.shape_cast %101 : vector<16x8xf32> to vector<2x8x8xf32>
    %107 = vector.shape_cast %104 : vector<16x8xf32> to vector<2x8x8xf32>
    "tpu.trace_start"() <{level = 10 : i32, message = "bsd,btd->bst"}> : () -> ()
    %cst_75 = arith.constant dense<0.000000e+00> : vector<2x8x8xf32>
    %108 = tpu.matmul %105, %106, %cst_75 {dimension_numbers = #tpu.dot_dimension_numbers<[2], [2], [1], [1], [0, 0, 0, 1, 1, 1], [0], [0]>} : vector<2x8x8xf32>, vector<2x8x8xf32>, vector<2x8x8xf32> -> vector<2x8x8xf32>
    "tpu.trace_stop"() : () -> ()
    %cst_76 = arith.constant dense<0xFF800000> : vector<2x8xf32>
    %109 = vector.multi_reduction <maximumf>, %108, %cst_76 [2] : vector<2x8x8xf32> to vector<2x8xf32>
    %110 = vector.shape_cast %109 : vector<2x8xf32> to vector<2x8x1xf32>
    %111 = vector.broadcast %110 : vector<2x8x1xf32> to vector<2x8x8xf32>
    %112 = arith.subf %108, %111 : vector<2x8x8xf32>
    %113 = math.exp %112 : vector<2x8x8xf32>
    %cst_77 = arith.constant dense<0.000000e+00> : vector<2x8xf32>
    %114 = vector.multi_reduction <add>, %113, %cst_77 [2] : vector<2x8x8xf32> to vector<2x8xf32>
    %115 = vector.shape_cast %114 : vector<2x8xf32> to vector<2x8x1xf32>
    %116 = tpu.reciprocal %115 {approx = true} : vector<2x8x1xf32> -> vector<2x8x1xf32>
    %117 = vector.broadcast %116 : vector<2x8x1xf32> to vector<2x8x8xf32>
    %118 = arith.mulf %113, %117 : vector<2x8x8xf32>
    "tpu.trace_start"() <{level = 10 : i32, message = "bst,btd->bsd"}> : () -> ()
    %cst_78 = arith.constant dense<0.000000e+00> : vector<2x8x8xf32>
    %119 = tpu.matmul %118, %107, %cst_78 {dimension_numbers = #tpu.dot_dimension_numbers<[2], [1], [1], [2], [0, 0, 0, 1, 1, 2], [0], [0]>} : vector<2x8x8xf32>, vector<2x8x8xf32>, vector<2x8x8xf32> -> vector<2x8x8xf32>
    "tpu.trace_stop"() : () -> ()
    %120 = vector.shape_cast %119 : vector<2x8x8xf32> to vector<16x8xf32>
    %c3_79 = arith.constant 3 : index
    %c0_80 = arith.constant 0 : index
    %c0_81 = arith.constant 0 : index
    %121 = vector.load %arg5[%c3_79, %c0_80, %c0_81] : memref<4x8x32xf32, #tpu.memory_space<vmem>>, vector<1x8x32xf32>
    %122 = vector.shape_cast %121 : vector<1x8x32xf32> to vector<8x32xf32>
    %cst_82 = arith.constant dense<0.000000e+00> : vector<16x32xf32>
    %123 = tpu.matmul %120, %122, %cst_82 {dimension_numbers = #tpu.dot_dimension_numbers<[1], [0], [0], [1], [0, 0, 1, 1], [], []>} : vector<16x8xf32>, vector<8x32xf32>, vector<16x32xf32> -> vector<16x32xf32>
    %124 = arith.addf %93, %123 : vector<16x32xf32>
    %125 = arith.addf %124, %0 : vector<16x32xf32>
    %cst_83 = arith.constant dense<0.000000e+00> : vector<16xf32>
    %126 = vector.multi_reduction <add>, %125, %cst_83 [1] : vector<16x32xf32> to vector<16xf32>
    %127 = vector.shape_cast %126 : vector<16xf32> to vector<16x1xf32>
    %cst_84 = arith.constant 3.200000e+01 : f32
    %128 = vector.broadcast %cst_84 : f32 to vector<16x1xf32>
    %129 = arith.divf %127, %128 : vector<16x1xf32>
    %130 = vector.broadcast %129 : vector<16x1xf32> to vector<16x32xf32>
    %131 = arith.subf %125, %130 : vector<16x32xf32>
    %132 = arith.mulf %131, %131 : vector<16x32xf32>
    %cst_85 = arith.constant dense<0.000000e+00> : vector<16xf32>
    %133 = vector.multi_reduction <add>, %132, %cst_85 [1] : vector<16x32xf32> to vector<16xf32>
    %134 = vector.shape_cast %133 : vector<16xf32> to vector<16x1xf32>
    %cst_86 = arith.constant 3.200000e+01 : f32
    %135 = vector.broadcast %cst_86 : f32 to vector<16x1xf32>
    %136 = arith.divf %134, %135 : vector<16x1xf32>
    %137 = vector.broadcast %129 : vector<16x1xf32> to vector<16x32xf32>
    %138 = arith.subf %125, %137 : vector<16x32xf32>
    %cst_87 = arith.constant 9.99999997E-7 : f32
    %139 = vector.broadcast %cst_87 : f32 to vector<16x1xf32>
    %140 = arith.addf %136, %139 : vector<16x1xf32>
    %141 = math.rsqrt %140 : vector<16x1xf32>
    %142 = vector.broadcast %141 : vector<16x1xf32> to vector<16x32xf32>
    %143 = arith.mulf %138, %142 : vector<16x32xf32>
    %144 = vector.extract_strided_slice %1 {offsets = [0, 0], sizes = [1, 32], strides = [1, 1]} : vector<5x32xf32> to vector<1x32xf32>
    %145 = vector.broadcast %144 : vector<1x32xf32> to vector<16x32xf32>
    %146 = arith.mulf %143, %145 : vector<16x32xf32>
    %147 = vector.extract_strided_slice %1 {offsets = [1, 0], sizes = [1, 32], strides = [1, 1]} : vector<5x32xf32> to vector<1x32xf32>
    %148 = vector.broadcast %147 : vector<1x32xf32> to vector<16x32xf32>
    %149 = arith.addf %146, %148 : vector<16x32xf32>
    %c0_88 = arith.constant 0 : index
    %c0_89 = arith.constant 0 : index
    %150 = vector.load %arg6[%c0_88, %c0_89] : memref<32x64xf32, #tpu.memory_space<vmem>>, vector<32x64xf32>
    %cst_90 = arith.constant dense<0.000000e+00> : vector<16x64xf32>
    %151 = tpu.matmul %149, %150, %cst_90 {dimension_numbers = #tpu.dot_dimension_numbers<[1], [0], [0], [1], [0, 0, 1, 1], [], []>} : vector<16x32xf32>, vector<32x64xf32>, vector<16x64xf32> -> vector<16x64xf32>
    %c0_91 = arith.constant 0 : index
    %c0_92 = arith.constant 0 : index
    %152 = vector.load %arg7[%c0_91, %c0_92] : memref<1x64xf32, #tpu.memory_space<vmem>>, vector<1x64xf32>
    %153 = vector.broadcast %152 : vector<1x64xf32> to vector<16x64xf32>
    %154 = arith.addf %151, %153 : vector<16x64xf32>
    %cst_93 = arith.constant 0.000000e+00 : f32
    %155 = vector.broadcast %cst_93 : f32 to vector<16x64xf32>
    %156 = arith.maximumf %154, %155 : vector<16x64xf32>
    %c0_94 = arith.constant 0 : index
    %c0_95 = arith.constant 0 : index
    %157 = vector.load %arg8[%c0_94, %c0_95] : memref<64x32xf32, #tpu.memory_space<vmem>>, vector<64x32xf32>
    %cst_96 = arith.constant dense<0.000000e+00> : vector<16x32xf32>
    %158 = tpu.matmul %156, %157, %cst_96 {dimension_numbers = #tpu.dot_dimension_numbers<[1], [0], [0], [1], [0, 0, 1, 1], [], []>} : vector<16x64xf32>, vector<64x32xf32>, vector<16x32xf32> -> vector<16x32xf32>
    %159 = vector.extract_strided_slice %1 {offsets = [2, 0], sizes = [1, 32], strides = [1, 1]} : vector<5x32xf32> to vector<1x32xf32>
    %160 = vector.broadcast %159 : vector<1x32xf32> to vector<16x32xf32>
    %161 = arith.addf %158, %160 : vector<16x32xf32>
    %162 = arith.addf %161, %149 : vector<16x32xf32>
    %cst_97 = arith.constant dense<0.000000e+00> : vector<16xf32>
    %163 = vector.multi_reduction <add>, %162, %cst_97 [1] : vector<16x32xf32> to vector<16xf32>
    %164 = vector.shape_cast %163 : vector<16xf32> to vector<16x1xf32>
    %cst_98 = arith.constant 3.200000e+01 : f32
    %165 = vector.broadcast %cst_98 : f32 to vector<16x1xf32>
    %166 = arith.divf %164, %165 : vector<16x1xf32>
    %167 = vector.broadcast %166 : vector<16x1xf32> to vector<16x32xf32>
    %168 = arith.subf %162, %167 : vector<16x32xf32>
    %169 = arith.mulf %168, %168 : vector<16x32xf32>
    %cst_99 = arith.constant dense<0.000000e+00> : vector<16xf32>
    %170 = vector.multi_reduction <add>, %169, %cst_99 [1] : vector<16x32xf32> to vector<16xf32>
    %171 = vector.shape_cast %170 : vector<16xf32> to vector<16x1xf32>
    %cst_100 = arith.constant 3.200000e+01 : f32
    %172 = vector.broadcast %cst_100 : f32 to vector<16x1xf32>
    %173 = arith.divf %171, %172 : vector<16x1xf32>
    %174 = vector.broadcast %166 : vector<16x1xf32> to vector<16x32xf32>
    %175 = arith.subf %162, %174 : vector<16x32xf32>
    %cst_101 = arith.constant 9.99999997E-7 : f32
    %176 = vector.broadcast %cst_101 : f32 to vector<16x1xf32>
    %177 = arith.addf %173, %176 : vector<16x1xf32>
    %178 = math.rsqrt %177 : vector<16x1xf32>
    %179 = vector.broadcast %178 : vector<16x1xf32> to vector<16x32xf32>
    %180 = arith.mulf %175, %179 : vector<16x32xf32>
    %181 = vector.extract_strided_slice %1 {offsets = [3, 0], sizes = [1, 32], strides = [1, 1]} : vector<5x32xf32> to vector<1x32xf32>
    %182 = vector.broadcast %181 : vector<1x32xf32> to vector<16x32xf32>
    %183 = arith.mulf %180, %182 : vector<16x32xf32>
    %184 = vector.extract_strided_slice %1 {offsets = [4, 0], sizes = [1, 32], strides = [1, 1]} : vector<5x32xf32> to vector<1x32xf32>
    %185 = vector.broadcast %184 : vector<1x32xf32> to vector<16x32xf32>
    %186 = arith.addf %183, %185 : vector<16x32xf32>
    %c0_102 = arith.constant 0 : index
    %c0_103 = arith.constant 0 : index
    %187 = vector.load %arg10[%c0_102, %c0_103] : memref<16x32xf32, #tpu.memory_space<vmem>>, vector<16x32xf32>
    tpu.vector_store %arg10[%c0_102, %c0_103], %186 {strides = array<i32>} : memref<16x32xf32, #tpu.memory_space<vmem>>, vector<16x32xf32>,
    return
  }
  func.func @transform_0(%arg0: i32) -> (i32, i32) {
    %c0_i32 = arith.constant 0 : i32
    %c0_i32_0 = arith.constant 0 : i32
    %c0_i32_1 = arith.constant 0 : i32
    return %c0_i32, %c0_i32_0 : i32, i32
  }
  func.func @transform_1(%arg0: i32) -> (i32, i32, i32) {
    %c0_i32 = arith.constant 0 : i32
    %c0_i32_0 = arith.constant 0 : i32
    %c0_i32_1 = arith.constant 0 : i32
    %c0_i32_2 = arith.constant 0 : i32
    return %c0_i32, %c0_i32_0, %c0_i32_1 : i32, i32, i32
  }
  func.func @transform_2(%arg0: i32) -> (i32, i32, i32) {
    %c0_i32 = arith.constant 0 : i32
    %c0_i32_0 = arith.constant 0 : i32
    %c0_i32_1 = arith.constant 0 : i32
    %c0_i32_2 = arith.constant 0 : i32
    return %c0_i32, %c0_i32_0, %c0_i32_1 : i32, i32, i32
  }
  func.func @transform_3(%arg0: i32) -> (i32, i32, i32) {
    %c0_i32 = arith.constant 0 : i32
    %c0_i32_0 = arith.constant 0 : i32
    %c0_i32_1 = arith.constant 0 : i32
    %c0_i32_2 = arith.constant 0 : i32
    return %c0_i32, %c0_i32_0, %c0_i32_1 : i32, i32, i32
  }
  func.func @transform_4(%arg0: i32) -> (i32, i32, i32) {
    %c0_i32 = arith.constant 0 : i32
    %c0_i32_0 = arith.constant 0 : i32
    %c0_i32_1 = arith.constant 0 : i32
    %c0_i32_2 = arith.constant 0 : i32
    return %c0_i32, %c0_i32_0, %c0_i32_1 : i32, i32, i32
  }
  func.func @transform_5(%arg0: i32) -> (i32, i32) {
    %c0_i32 = arith.constant 0 : i32
    %c0_i32_0 = arith.constant 0 : i32
    %c0_i32_1 = arith.constant 0 : i32
    return %c0_i32, %c0_i32_0 : i32, i32
  }
  func.func @transform_6(%arg0: i32) -> (i32, i32) {
    %c0_i32 = arith.constant 0 : i32
    %c0_i32_0 = arith.constant 0 : i32
    %c0_i32_1 = arith.constant 0 : i32
    return %c0_i32, %c0_i32_0 : i32, i32
  }
  func.func @transform_7(%arg0: i32) -> (i32, i32) {
    %c0_i32 = arith.constant 0 : i32
    %c0_i32_0 = arith.constant 0 : i32
    %c0_i32_1 = arith.constant 0 : i32
    return %c0_i32, %c0_i32_0 : i32, i32
  }
  func.func @transform_8(%arg0: i32) -> (i32, i32) {
    %c0_i32 = arith.constant 0 : i32
    %c0_i32_0 = arith.constant 0 : i32
    %c0_i32_1 = arith.constant 0 : i32
    return %c0_i32, %c0_i32_0 : i32, i32
  }
  func.func @transform_9(%arg0: i32) -> (i32, i32) {
    %c0_i32 = arith.constant 0 : i32
    %c0_i32_0 = arith.constant 0 : i32
    %c0_i32_1 = arith.constant 0 : i32
    return %c0_i32, %c0_i32_0 : i32, i32
  }
}

</mosaic_0001>

<bundles_post_ra>
// kernel: tpu_custom_call.1
= control target key start
LH: loop header
LB: loop body
LE: loop exit
PB: predicated region body
PF: predicated region fallthrough
CT: control target
= control target key end

     0   :  { %vm40_vm0 = vcmask 261120   ;;  %s4053_s0 = inlined_call_operand.vmem [shape: f32[16,32], index: 0, kind: input, shape index: {}]   ;;  %s4054_s1 = inlined_call_operand.vmem [shape: f32[4,32,8], index: 1, kind: input, shape index: {}]   ;;  %s4055_s2 = inlined_call_operand.vmem [shape: f32[4,32,8], index: 2, kind: input, shape index: {}]   ;;  %s4056_s3 = inlined_call_operand.vmem [shape: f32[4,32,8], index: 3, kind: input, shape index: {}]   ;;  %s4057_s4 = inlined_call_operand.vmem [shape: f32[4,8,32], index: 4, kind: input, shape index: {}]   ;;  %s4058_s5 = inlined_call_operand.vmem [shape: f32[32,64], index: 5, kind: input, shape index: {}]   ;;  %s4059_s6 = inlined_call_operand.vmem [shape: f32[1,64], index: 6, kind: input, shape index: {}]   ;;  %s4060_s7 = inlined_call_operand.vmem [shape: f32[64,32], index: 7, kind: input, shape index: {}]   ;;  %s4061_s8 = inlined_call_operand.vmem [shape: f32[5,32], index: 8, kind: input, shape index: {}]   ;;  %s4062_s9 = inlined_call_operand.hbm [shape: f32[16,32], index: 9, kind: output, shape index: {}]  }
   0x1   :  { %v36_v0 = vld [vmem:[%s4054_s1] sm:$0xff]  ;;  %v37_v1 = vld [vmem:[%s4054_s1 + $0x8] sm:$0xff]  ;;  %v38_v2 = vld [vmem:[%s4054_s1 + $0x10] sm:$0xff] }
   0x2   :  { %v3405_v3 = vpack.c.bf16 %v37_v1, %v36_v0  ;;  %v39_v4 = vld [vmem:[%s4054_s1 + $0x18] sm:$0xff]  ;;  %v3670_v5 = vld [vmem:[%s4053_s0] sm:$0xff]  ;;  %v125_v8 = vld [vmem:[%s4055_s2 + $0x8] sm:$0xff] }
   0x3   :  { %v3409_v6 = vpack.c.bf16 %v39_v4, %v38_v2  ;;  %3151 = vmatprep.mubr.msk.f32.mxu1 %vm40_vm0, %v3670_v5  ;;  %v124_v7 = vld [vmem:[%s4055_s2] sm:$0xff]  ;;  %3173 = vmatprep.mubr.msk.f32.mxu0 %vm40_vm0, %v3670_v5 }
   0x4   :  { %3406 = vmatprep.subr.bf16.mxu1 %v3405_v3 }
   0x5   :  { %14 = vsyncpa [#allocation3], 0  ;;  %3408 = vmatpush3.bf16.msra.mxu1 %v3405_v3  ;;  %v3413_v9 = vpack.c.bf16 %v125_v8, %v124_v7  ;;  %v126_v10 = vld [vmem:[%s4055_s2 + $0x10] sm:$0xff]  ;;  %v127_v11 = vld [vmem:[%s4055_s2 + $0x18] sm:$0xff]  ;;  %v3600_v14 = vmov 0.0   ;;  %vm3601_vm1 = vmmov 0  }
   0x6   :  { %3410 = vmatprep.subr.bf16.mxu1 %v3409_v6  ;;  %v3691_v12 = vld [vmem:[%s4053_s0 + $0x8] sm:$0xff]  ;;  %v3417_v13 = vpack.c.bf16 %v127_v11, %v126_v10  ;;  %vm282_vm2 = vcmask 64512   ;;  %v203_v21 = vld [vmem:[%s4056_s3] sm:$0xff]  ;;  %v205_v23 = vld [vmem:[%s4056_s3 + $0x10] sm:$0xff]  ;;  %vm2771_vm3 = vcmask 523264  }
   0x7   :  { %v204_v22 = vld [vmem:[%s4056_s3 + $0x8] sm:$0xff]  ;;  %v206_v25 = vld [vmem:[%s4056_s3 + $0x18] sm:$0xff]  ;;  %v2929_v44 = vld [vmem:[%s4055_s2 + $0x20] sm:$0xff] }
   0x8   :  { %v3421_v24 = vpack.c.bf16 %v204_v22, %v203_v21  ;;  %v3425_v26 = vpack.c.bf16 %v206_v25, %v205_v23  ;;  %v2930_v45 = vld [vmem:[%s4055_s2 + $0x28] sm:$0xff]  ;;  %v2923_v48 = vld [vmem:[%s4054_s1 + $0x20] sm:$0xff]  ;;  %v2931_v53 = vld [vmem:[%s4055_s2 + $0x30] sm:$0xff] }
   0x9   :  { %3412 = vmatpush3.bf16.msra.mxu1 %v3409_v6  ;;  %v3437_v46 = vpack.c.bf16 %v2930_v45, %v2929_v44  ;;  %v2924_v49 = vld [vmem:[%s4054_s1 + $0x28] sm:$0xff]  ;;  %v2932_v54 = vld [vmem:[%s4055_s2 + $0x38] sm:$0xff]  ;;  %v2925_v58 = vld [vmem:[%s4054_s1 + $0x30] sm:$0xff] }
   0xa   :  { %3414 = vmatprep.subr.bf16.mxu1 %v3413_v9  ;;  %3422 = vmatprep.subr.bf16.mxu0 %v3421_v24  ;;  %v3429_v50 = vpack.c.bf16 %v2924_v49, %v2923_v48  ;;  %v3441_v57 = vpack.c.bf16 %v2932_v54, %v2931_v53  ;;  %v2926_v59 = vld [vmem:[%s4054_s1 + $0x38] sm:$0xff]  ;;  %v2935_v10 = vld [vmem:[%s4056_s3 + $0x20] sm:$0xff]  ;;  %v2936_v11 = vld [vmem:[%s4056_s3 + $0x28] sm:$0xff] }
   0xb   :  { %3424 = vmatpush3.bf16.msra.mxu0 %v3421_v24  ;;  %v3433_v62 = vpack.c.bf16 %v2926_v59, %v2925_v58  ;;  %v2952_v44 = vld [vmem:[%s4054_s1 + $0x40] sm:$0xff]  ;;  %v2953_v45 = vld [vmem:[%s4054_s1 + $0x48] sm:$0xff]  ;;  %v2955_v48 = vld [vmem:[%s4054_s1 + $0x58] sm:$0xff] }
   0xc   :  { %3152 = vmatmul.mubr.msk.f32.vlgmr.msra.gmra.mrb[0].mxu1 %vm40_vm0, %v3691_v12  ;;  %3426 = vmatprep.subr.bf16.mxu0 %v3425_v26  ;;  %v2967_v54 = vld [vmem:[%s4056_s3 + $0x58] sm:$0xff]  ;;  %v2959_v58 = vld [vmem:[%s4055_s2 + $0x48] sm:$0xff] }
   0xd   :  { %3416 = vmatpush3.bf16.msra.mxu1 %v3413_v9  ;;  %3162 = vmatprep.mubr.msk.f32.mxu1 %vm40_vm0, %v3670_v5 }
   0xe   :  { %3418 = vmatprep.subr.bf16.mxu1 %v3417_v13 }
   0xf   :  { %3428 = vmatpush3.bf16.msra.mxu0 %v3425_v26 }
  0x10   :  { %3186 = vmatprep.subr.mxu0 %v3600_v14 }
  0x11   :  { %3420 = vmatpush3.bf16.msra.mxu1 %v3417_v13  ;;  %v2937_v13 = vld [vmem:[%s4056_s3 + $0x30] sm:$0xff] }
  0x12   :  { %3176 = vmatprep.subr.mxu1 %v3600_v14  ;;  %3174 = vmatmul.mubr.msk.f32.vlgmr.msra.gmra.mrb[0].mxu0 %vm40_vm0, %v3691_v12 }
  0x13   :  { %3188 = vmatprep.mubr.msk.f32.mxu0 %vm3601_vm1, %v3600_v14 }
  0x14   :  { %3163 = vmatmul.mubr.msk.f32.vlgmr.msra.gmra.mrb[2].mxu1 %vm40_vm0, %v3691_v12 }
  0x15   :  { %3178 = vmatprep.mubr.msk.f32.mxu1 %vm3601_vm1, %v3600_v14 }
  0xdf   :  { %v3153_v15 = vpop.f32.mrb[0].mxu1 }
  0xe0   :  { %v113_v16 = vpop.f32.mrb[1].mxu1  ;;  %v123_v20 = vmul.f32 0.35355338, %v3153_v15  ;;  %v3445_v15 = vpack.c.bf16 %v2936_v11, %v2935_v10 }
  0xe1   :  { %v122_v19 = vmul.f32 0.35355338, %v113_v16  ;;  %v2938_v16 = vld [vmem:[%s4056_s3 + $0x38] sm:$0xff] }
  0xe5   :  { %v3175_v43 = vpop.f32.mrb[0].mxu0 }
  0xe6   :  { %v273_v47 = vpop.f32.mrb[1].mxu0 }
  0xe7   :  { %v3164_v17 = vpop.f32.mrb[2].mxu1  ;;  %3187 = vmatpush3.msra.mxu0 %v273_v47  ;;  %v2954_v47 = vld [vmem:[%s4054_s1 + $0x50] sm:$0xff] }
  0xe8   :  { %v194_v18 = vpop.f32.mrb[3].mxu1  ;;  %3430 = vmatprep.subr.bf16.mxu0 %v3429_v50  ;;  %v3457_v49 = vpack.c.bf16 %v2955_v48, %v2954_v47 }
  0xe9   :  { %3177 = vmatpush3.xpose.msk.msra.mxu1 %vm282_vm2, %v194_v18 }
  0xea   :  { %3181 = vmatprep.subr.mxu1 %v3600_v14 }
  0xec   :  { %3179 = vmatmul.mubr.msk.f32.vlgmr.msra.gmra.mrb[4].mxu1 %vm282_vm2, %v122_v19 }
  0xed   :  { %3182 = vmatpush3.xpose.msk.msra.mxu1 %vm282_vm2, %v3164_v17  ;;  %3183 = vmatprep.mubr.msk.f32.mxu1 %vm3601_vm1, %v3600_v14  ;;  %v3449_v17 = vpack.c.bf16 %v2938_v16, %v2937_v13 }
  0xee   :  { %3191 = vmatprep.subr.mxu1 %v3600_v14 }
  0xf0   :  { %3184 = vmatmul.mubr.msk.f32.vlgmr.msra.gmra.mrb[6].mxu1 %vm282_vm2, %v123_v20 }
  0xf1   :  { %3193 = vmatprep.mubr.msk.f32.mxu1 %vm3601_vm1, %v3600_v14  ;;  %3192 = vmatpush3.msra.mxu1 %v3175_v43  ;;  %v603_v43 = vld [vmem:[%s4057_s4] sm:$0xff] }
  0xf2   :  { %3438 = vmatprep.subr.bf16.mxu1 %v3437_v46 }
 0x1bf   :  { %v355_v27 = vpop.f32.mrb[4].mxu1 }
 0x1c0   :  { %v3180_v28 = vpop.f32.mrb[5].mxu1  ;;  %v435_v32 = vsel %vm282_vm2, %v355_v27, -inf }
 0x1c3   :  { %v431_v29 = vpop.f32.mrb[6].mxu1 }
 0x1c4   :  { %v3185_v30 = vpop.f32.mrb[7].mxu1  ;;  %v438_v31 = vsel %vm282_vm2, %v431_v29, -inf }
 0x1c5   :  { %439 = vmax.xlane.f32.xlu0 %v438_v31 }
 0x1c9   :  { %436 = vmax.xlane.f32.xlu0 %v435_v32 }
 0x252   :  { %v440_v33 = vpop.xlane.xlu0 %439 }
 0x253   :  { %v442_v34 = vsub.f32 %v431_v29, %v440_v33 }
 0x255   :  { %v445_v35 = vmul.f32 1.442695, %v442_v34 }
 0x256   :  { %v437_v36 = vpop.xlane.xlu0 %436 }
 0x257   :  { %3536 = vpow2.f32 %v445_v35  ;;  %v441_v37 = vsub.f32 %v355_v27, %v437_v36 }
 0x259   :  { %v443_v38 = vmul.f32 1.442695, %v441_v37 }
 0x25b   :  { %3538 = vpow2.f32 %v443_v38 }
 0x261   :  { %v3537_v39 = vpop.eup %3536 }
 0x262   :  { %v450_v40 = vsel %vm282_vm2, %v3537_v39, 0.0 }
 0x263   :  { %451 = vadd.xlane.f32.xlu1 %v450_v40 }
 0x265   :  { %v3539_v41 = vpop.eup %3538 }
 0x266   :  { %v447_v42 = vsel %vm282_vm2, %v3539_v41, 0.0 }
 0x267   :  { %448 = vadd.xlane.f32.xlu1 %v447_v42  ;;  %v2947_v42 = vld [vmem:[%s4057_s4 + $0x8] sm:$0xff] }
 0x2f0   :  { %v452_v51 = vpop.xlane.xlu1 %451 }
 0x2f1   :  { %3540 = vrcp.f32 %v452_v51  ;;  %v2965_v51 = vld [vmem:[%s4056_s3 + $0x48] sm:$0xff] }
 0x2f4   :  { %v449_v52 = vpop.xlane.xlu1 %448 }
 0x2f5   :  { %3542 = vrcp.f32 %v449_v52  ;;  %v2966_v52 = vld [vmem:[%s4056_s3 + $0x50] sm:$0xff] }
 0x2fb   :  { %v3541_v55 = vpop.eup %3540 }
 0x2fc   :  { %v456_v56 = vmul.f32 %v3541_v55, %v3537_v39  ;;  %v3473_v55 = vpack.c.bf16 %v2967_v54, %v2966_v52 }
 0x2fe   :  { %3194 = vmatmul.mubr.msk.f32.vlgmr.msra.gmra.mrb[8].mxu1 %vm282_vm2, %v456_v56 }
 0x2ff   :  { %v3543_v60 = vpop.eup %3542  ;;  %3440 = vmatpush3.bf16.msra.mxu1 %v3437_v46  ;;  %3215 = vmatprep.mubr.msk.f32.mxu1 %vm40_vm0, %v3670_v5  ;;  %v3453_v46 = vpack.c.bf16 %v2953_v45, %v2952_v44  ;;  %v2987_v45 = vld [vmem:[%s4055_s2 + $0x70] sm:$0xff] }
 0x300   :  { %v455_v61 = vmul.f32 %v3543_v60, %v3539_v41  ;;  %3442 = vmatprep.subr.bf16.mxu1 %v3441_v57 }
 0x302   :  { %3189 = vmatmul.mubr.msk.f32.vlgmr.msra.gmra.mrb[2].mxu0 %vm282_vm2, %v455_v61 }
 0x303   :  { %3432 = vmatpush3.bf16.msra.mxu0 %v3429_v50  ;;  %3444 = vmatpush3.bf16.msra.mxu1 %v3441_v57  ;;  %v2964_v50 = vld [vmem:[%s4056_s3 + $0x40] sm:$0xff] }
 0x304   :  { %3434 = vmatprep.subr.bf16.mxu0 %v3433_v62  ;;  %3204 = vmatprep.mubr.msk.f32.mxu0 %vm40_vm0, %v3670_v5  ;;  %v3469_v53 = vpack.c.bf16 %v2965_v51, %v2964_v50  ;;  %v2958_v57 = vld [vmem:[%s4055_s2 + $0x40] sm:$0xff] }
 0x305   :  { %3229 = vmatprep.subr.mxu1 %v3600_v14  ;;  %v3461_v60 = vpack.c.bf16 %v2959_v58, %v2958_v57  ;;  %v2991_v58 = vld [vmem:[%s4056_s3 + $0x60] sm:$0xff] }
 0x306   :  { %3216 = vmatmul.mubr.msk.f32.vlgmr.msra.gmra.mrb[10].mxu1 %vm40_vm0, %v3691_v12 }
 0x307   :  { %3436 = vmatpush3.bf16.msra.mxu0 %v3433_v62  ;;  %3231 = vmatprep.mubr.msk.f32.mxu1 %vm3601_vm1, %v3600_v14 }
 0x308   :  { %3446 = vmatprep.subr.bf16.mxu0 %v3445_v15 }
 0x30a   :  { %3205 = vmatmul.mubr.msk.f32.vlgmr.msra.gmra.mrb[4].mxu0 %vm40_vm0, %v3691_v12 }
 0x30b   :  { %3226 = vmatprep.mubr.msk.f32.mxu0 %vm40_vm0, %v3670_v5  ;;  %3448 = vmatpush3.bf16.msra.mxu0 %v3445_v15 }
 0x30c   :  { %3450 = vmatprep.subr.bf16.mxu0 %v3449_v17 }
 0x30f   :  { %3452 = vmatpush3.bf16.msra.mxu0 %v3449_v17 }
 0x310   :  { %3239 = vmatprep.subr.mxu0 %v3600_v14 }
 0x312   :  { %3227 = vmatmul.mubr.msk.f32.vlgmr.msra.gmra.mrb[6].mxu0 %vm40_vm0, %v3691_v12 }
 0x313   :  { %3241 = vmatprep.mubr.msk.f32.mxu0 %vm3601_vm1, %v3600_v14 }
 0x3d1   :  { %v3772_v63 = vpop.f32.mrb[8].mxu1 }
 0x3d2   :  { %v3195_v0 = vpop.f32.mrb[9].mxu1 }
 0x3d3   :  { %v2960_v0 = vld [vmem:[%s4055_s2 + $0x50] sm:$0xff] }
 0x3d5   :  { %v3774_v1 = vpop.f32.mrb[2].mxu0 }
 0x3d6   :  { %v3190_v2 = vpop.f32.mrb[3].mxu0 }
 0x3d7   :  { %v2961_v2 = vld [vmem:[%s4055_s2 + $0x58] sm:$0xff] }
 0x3d9   :  { %v3217_v3 = vpop.f32.mrb[10].mxu1 }
 0x3da   :  { %v757_v4 = vpop.f32.mrb[11].mxu1 }
 0x3db   :  { %3230 = vmatpush3.xpose.msk.msra.mxu1 %vm282_vm2, %v757_v4 }
 0x3dc   :  { %3234 = vmatprep.subr.mxu1 %v3600_v14 }
 0x3dd   :  { %v3206_v6 = vpop.f32.mrb[4].mxu0 }
 0x3de   :  { %v675_v7 = vpop.f32.mrb[5].mxu0  ;;  %v685_v9 = vmul.f32 0.35355338, %v3206_v6 }
 0x3df   :  { %v684_v8 = vmul.f32 0.35355338, %v675_v7 }
 0x3e1   :  { %3232 = vmatmul.mubr.msk.f32.vlgmr.msra.gmra.mrb[12].mxu1 %vm282_vm2, %v684_v8 }
 0x3e2   :  { %3235 = vmatpush3.xpose.msk.msra.mxu1 %vm282_vm2, %v3217_v3  ;;  %3236 = vmatprep.mubr.msk.f32.mxu1 %vm3601_vm1, %v3600_v14  ;;  %v3465_v3 = vpack.c.bf16 %v2961_v2, %v2960_v0 }
 0x3e3   :  { %3244 = vmatprep.subr.mxu1 %v3600_v14 }
 0x3e5   :  { %3237 = vmatmul.mubr.msk.f32.vlgmr.msra.gmra.mrb[14].mxu1 %vm282_vm2, %v685_v9  ;;  %v3228_v34 = vpop.f32.mrb[6].mxu0 }
 0x3e6   :  { %3246 = vmatprep.mubr.msk.f32.mxu1 %vm3601_vm1, %v3600_v14  ;;  %v837_v35 = vpop.f32.mrb[7].mxu0  ;;  %3245 = vmatpush3.msra.mxu1 %v3228_v34 }
 0x3e7   :  { %3240 = vmatpush3.msra.mxu0 %v837_v35  ;;  %3454 = vmatprep.subr.bf16.mxu1 %v3453_v46 }
 0x3e8   :  { %3249 = vmatprep.subr.mxu0 %v2947_v42 }
 0x4b4   :  { %v918_v18 = vpop.f32.mrb[12].mxu1 }
 0x4b5   :  { %v3233_v19 = vpop.f32.mrb[13].mxu1  ;;  %v998_v20 = vsel %vm282_vm2, %v918_v18, -inf }
 0x4b6   :  { %999 = vmax.xlane.f32.xlu0 %v998_v20 }
 0x4b8   :  { %v994_v21 = vpop.f32.mrb[14].mxu1 }
 0x4b9   :  { %v3238_v22 = vpop.f32.mrb[15].mxu1  ;;  %v1001_v23 = vsel %vm282_vm2, %v994_v21, -inf }
 0x4ba   :  { %1002 = vmax.xlane.f32.xlu1 %v1001_v23 }
 0x543   :  { %v1000_v24 = vpop.xlane.xlu0 %999 }
 0x544   :  { %v1004_v25 = vsub.f32 %v918_v18, %v1000_v24 }
 0x546   :  { %v1006_v26 = vmul.f32 1.442695, %v1004_v25 }
 0x547   :  { %v1003_v27 = vpop.xlane.xlu1 %1002 }
 0x548   :  { %3544 = vpow2.f32 %v1006_v26  ;;  %v1005_v28 = vsub.f32 %v994_v21, %v1003_v27 }
 0x54a   :  { %v1008_v29 = vmul.f32 1.442695, %v1005_v28 }
 0x54c   :  { %3546 = vpow2.f32 %v1008_v29  ;;  %v2976_v29 = vld [vmem:[%s4057_s4 + $0x10] sm:$0xff] }
 0x552   :  { %v3545_v30 = vpop.eup %3544 }
 0x553   :  { %v1010_v31 = vsel %vm282_vm2, %v3545_v30, 0.0 }
 0x554   :  { %1011 = vadd.xlane.f32.xlu0 %v1010_v31 }
 0x556   :  { %v3547_v32 = vpop.eup %3546 }
 0x557   :  { %v1013_v33 = vsel %vm282_vm2, %v3547_v32, 0.0 }
 0x558   :  { %1014 = vadd.xlane.f32.xlu1 %v1013_v33 }
 0x5e1   :  { %v1012_v36 = vpop.xlane.xlu0 %1011 }
 0x5e2   :  { %3548 = vrcp.f32 %v1012_v36  ;;  %v2985_v36 = vld [vmem:[%s4055_s2 + $0x60] sm:$0xff] }
 0x5e5   :  { %v1015_v37 = vpop.xlane.xlu1 %1014 }
 0x5e6   :  { %3550 = vrcp.f32 %v1015_v37  ;;  %v2986_v37 = vld [vmem:[%s4055_s2 + $0x68] sm:$0xff] }
 0x5ec   :  { %v3549_v38 = vpop.eup %3548 }
 0x5ed   :  { %v1018_v39 = vmul.f32 %v3549_v38, %v3545_v30  ;;  %v2979_v38 = vld [vmem:[%s4054_s1 + $0x60] sm:$0xff] }
 0x5ef   :  { %3242 = vmatmul.mubr.msk.f32.vlgmr.msra.gmra.mrb[8].mxu0 %vm282_vm2, %v1018_v39  ;;  %v3485_v39 = vpack.c.bf16 %v2986_v37, %v2985_v36 }
 0x5f0   :  { %v3551_v40 = vpop.eup %3550  ;;  %3250 = vmatpush3.msra.mxu0 %v2947_v42  ;;  %v2981_v42 = vld [vmem:[%s4054_s1 + $0x70] sm:$0xff] }
 0x5f1   :  { %v1019_v41 = vmul.f32 %v3551_v40, %v3547_v32  ;;  %3254 = vmatprep.subr.mxu0 %v603_v43  ;;  %v2980_v40 = vld [vmem:[%s4054_s1 + $0x68] sm:$0xff] }
 0x5f3   :  { %3247 = vmatmul.mubr.msk.f32.vlgmr.msra.gmra.mrb[16].mxu1 %vm282_vm2, %v1019_v41  ;;  %v3477_v41 = vpack.c.bf16 %v2980_v40, %v2979_v38 }
 0x5f4   :  { %3267 = vmatprep.mubr.msk.f32.mxu1 %vm40_vm0, %v3670_v5  ;;  %3456 = vmatpush3.bf16.msra.mxu1 %v3453_v46  ;;  %v2988_v46 = vld [vmem:[%s4055_s2 + $0x78] sm:$0xff] }
 0x5f5   :  { %3458 = vmatprep.subr.bf16.mxu1 %v3457_v49  ;;  %v3489_v50 = vpack.c.bf16 %v2988_v46, %v2987_v45  ;;  %v2666_v46 = vld [vmem:[%s4058_s5 + $0x8] sm:$0xff] }
 0x5f8   :  { %3460 = vmatpush3.bf16.msra.mxu1 %v3457_v49 }
 0x5f9   :  { %3470 = vmatprep.subr.bf16.mxu1 %v3469_v53 }
 0x5fb   :  { %3268 = vmatmul.mubr.msk.f32.vlgmr.msra.gmra.mrb[18].mxu1 %vm40_vm0, %v3691_v12 }
 0x5fc   :  { %3289 = vmatprep.mubr.msk.f32.mxu1 %vm40_vm0, %v3670_v5  ;;  %3472 = vmatpush3.bf16.msra.mxu1 %v3469_v53 }
 0x5fd   :  { %3474 = vmatprep.subr.bf16.mxu1 %v3473_v55 }
 0x600   :  { %3476 = vmatpush3.bf16.msra.mxu1 %v3473_v55 }
 0x601   :  { %3297 = vmatprep.subr.mxu1 %v3600_v14 }
 0x603   :  { %3290 = vmatmul.mubr.msk.f32.vlgmr.msra.gmra.mrb[20].mxu1 %vm40_vm0, %v3691_v12 }
 0x604   :  { %3299 = vmatprep.mubr.msk.f32.mxu1 %vm3601_vm1, %v3600_v14 }
 0x6c2   :  { %v1089_v56 = vpop.f32.mrb[8].mxu0 }
 0x6c3   :  { %v3243_v59 = vpop.f32.mrb[9].mxu0  ;;  %3251 = vmatprep.mubr.msk.f32.mxu0 %vm282_vm2, %v1089_v56 }
 0x6c4   :  { %v2992_v59 = vld [vmem:[%s4056_s3 + $0x68] sm:$0xff] }
 0x6c6   :  { %v1162_v61 = vpop.f32.mrb[16].mxu1 }
 0x6c7   :  { %v3248_v62 = vpop.f32.mrb[17].mxu1  ;;  %3252 = vmatmul.mubr.msk.f32.vlgmr.msra.gmra.mrb[10].mxu0 %vm282_vm2, %v1162_v61  ;;  %v3493_v61 = vpack.c.bf16 %v2992_v59, %v2991_v58  ;;  %v2764_v58 = vld [vmem:[%s4060_s7 + $0x28] sm:$0xff] }
 0x6c8   :  { %3255 = vmatpush3.msra.mxu0 %v603_v43  ;;  %3256 = vmatprep.mubr.msk.f32.mxu0 %vm282_vm2, %v3774_v1  ;;  %v2982_v43 = vld [vmem:[%s4054_s1 + $0x78] sm:$0xff] }
 0x6c9   :  { %3462 = vmatprep.subr.bf16.mxu0 %v3461_v60  ;;  %v3481_v44 = vpack.c.bf16 %v2982_v43, %v2981_v42  ;;  %v2994_v62 = vld [vmem:[%s4056_s3 + $0x78] sm:$0xff] }
 0x6ce   :  { %v3269_v1 = vpop.f32.mrb[18].mxu1 }
 0x6cf   :  { %3257 = vmatmul.mubr.msk.f32.vlgmr.msra.gmra.mrb[10].mxu0 %vm282_vm2, %v3772_v63  ;;  %v1401_v4 = vpop.f32.mrb[19].mxu1  ;;  %v1411_v8 = vmul.f32 0.35355338, %v3269_v1 }
 0x6d0   :  { %3464 = vmatpush3.bf16.msra.mxu0 %v3461_v60  ;;  %3278 = vmatprep.mubr.msk.f32.mxu0 %vm40_vm0, %v3670_v5  ;;  %v1410_v9 = vmul.f32 0.35355338, %v1401_v4  ;;  %v2993_v60 = vld [vmem:[%s4056_s3 + $0x70] sm:$0xff] }
 0x6d1   :  { %3466 = vmatprep.subr.bf16.mxu0 %v3465_v3  ;;  %v3497_v0 = vpack.c.bf16 %v2994_v62, %v2993_v60 }
 0x6d4   :  { %3468 = vmatpush3.bf16.msra.mxu0 %v3465_v3 }
 0x6d5   :  { %3292 = vmatprep.subr.mxu0 %v3600_v14 }
 0x6d6   :  { %v3291_v6 = vpop.f32.mrb[20].mxu1 }
 0x6d7   :  { %3279 = vmatmul.mubr.msk.f32.vlgmr.msra.gmra.mrb[12].mxu0 %vm40_vm0, %v3691_v12  ;;  %v1563_v7 = vpop.f32.mrb[21].mxu1 }
 0x6d8   :  { %3294 = vmatprep.mubr.msk.f32.mxu0 %vm3601_vm1, %v3600_v14 }
 0x7aa   :  { %v3280_v63 = vpop.f32.mrb[12].mxu0 }
 0x7ab   :  { %v1483_v10 = vpop.f32.mrb[13].mxu0  ;;  %3298 = vmatpush3.xpose.msk.msra.mxu1 %vm282_vm2, %v3280_v63 }
 0x7ac   :  { %3293 = vmatpush3.xpose.msk.msra.mxu0 %vm282_vm2, %v1483_v10  ;;  %3307 = vmatprep.subr.mxu1 %v3600_v14 }
 0x7ad   :  { %3302 = vmatprep.subr.mxu0 %v3600_v14 }
 0x7ae   :  { %3300 = vmatmul.mubr.msk.f32.vlgmr.msra.gmra.mrb[22].mxu1 %vm282_vm2, %v1411_v8 }
 0x7af   :  { %3295 = vmatmul.mubr.msk.f32.vlgmr.msra.gmra.mrb[14].mxu0 %vm282_vm2, %v1410_v9  ;;  %3308 = vmatpush3.msra.mxu1 %v3291_v6 }
 0x7b0   :  { %3303 = vmatpush3.msra.mxu0 %v1563_v7  ;;  %3309 = vmatprep.mubr.msk.f32.mxu1 %vm3601_vm1, %v3600_v14 }
 0x7b1   :  { %3304 = vmatprep.mubr.msk.f32.mxu0 %vm3601_vm1, %v3600_v14  ;;  %3312 = vmatprep.subr.mxu0 %v2976_v29 }
 0x7b2   :  { %3478 = vmatprep.subr.bf16.mxu1 %v3477_v41 }
 0x881   :  { %v1720_v11 = vpop.f32.mrb[22].mxu1 }
 0x882   :  { %v1644_v13 = vpop.f32.mrb[14].mxu0  ;;  %v3301_v15 = vpop.f32.mrb[23].mxu1  ;;  %v1727_v16 = vsel %vm282_vm2, %v1720_v11, -inf }
 0x883   :  { %1728 = vmax.xlane.f32.xlu1 %v1727_v16  ;;  %v3296_v17 = vpop.f32.mrb[15].mxu0  ;;  %v1724_v18 = vsel %vm282_vm2, %v1644_v13, -inf }
 0x884   :  { %1725 = vmax.xlane.f32.xlu0 %v1724_v18 }
 0x910   :  { %v1729_v19 = vpop.xlane.xlu1 %1728 }
 0x911   :  { %v1731_v20 = vsub.f32 %v1720_v11, %v1729_v19  ;;  %v1726_v21 = vpop.xlane.xlu0 %1725 }
 0x912   :  { %v1730_v22 = vsub.f32 %v1644_v13, %v1726_v21 }
 0x913   :  { %v1734_v23 = vmul.f32 1.442695, %v1731_v20 }
 0x914   :  { %v1732_v24 = vmul.f32 1.442695, %v1730_v22 }
 0x915   :  { %3552 = vpow2.f32 %v1734_v23 }
 0x916   :  { %3554 = vpow2.f32 %v1732_v24 }
 0x91f   :  { %v3553_v25 = vpop.eup %3552 }
 0x920   :  { %v3555_v26 = vpop.eup %3554  ;;  %v1739_v27 = vsel %vm282_vm2, %v3553_v25, 0.0 }
 0x921   :  { %1740 = vadd.xlane.f32.xlu1 %v1739_v27  ;;  %v1736_v28 = vsel %vm282_vm2, %v3555_v26, 0.0 }
 0x922   :  { %1737 = vadd.xlane.f32.xlu0 %v1736_v28 }
 0x9ae   :  { %v1741_v30 = vpop.xlane.xlu1 %1740 }
 0x9af   :  { %3556 = vrcp.f32 %v1741_v30  ;;  %v1738_v31 = vpop.xlane.xlu0 %1737 }
 0x9b0   :  { %3558 = vrcp.f32 %v1738_v31 }
 0x9b9   :  { %v3557_v32 = vpop.eup %3556 }
 0x9ba   :  { %v3559_v33 = vpop.eup %3558  ;;  %v1745_v34 = vmul.f32 %v3557_v32, %v3553_v25 }
 0x9bb   :  { %v1744_v35 = vmul.f32 %v3559_v33, %v3555_v26  ;;  %v3003_v26 = vld [vmem:[%s4057_s4 + $0x18] sm:$0xff] }
 0x9bc   :  { %3310 = vmatmul.mubr.msk.f32.vlgmr.msra.gmra.mrb[24].mxu1 %vm282_vm2, %v1745_v34 }
 0x9bd   :  { %3305 = vmatmul.mubr.msk.f32.vlgmr.msra.gmra.mrb[16].mxu0 %vm282_vm2, %v1744_v35  ;;  %3325 = vmatprep.mubr.msk.f32.mxu1 %vm40_vm0, %v3670_v5 }
 0x9be   :  { %3313 = vmatpush3.msra.mxu0 %v2976_v29  ;;  %3480 = vmatpush3.bf16.msra.mxu1 %v3477_v41 }
 0x9bf   :  { %3486 = vmatprep.subr.bf16.mxu0 %v3485_v39  ;;  %3482 = vmatprep.subr.bf16.mxu1 %v3481_v44 }
 0x9c2   :  { %3484 = vmatpush3.bf16.msra.mxu1 %v3481_v44 }
 0x9c3   :  { %3494 = vmatprep.subr.bf16.mxu1 %v3493_v61 }
 0x9c5   :  { %3326 = vmatmul.mubr.msk.f32.vlgmr.msra.gmra.mrb[26].mxu1 %vm40_vm0, %v3691_v12 }
 0x9c6   :  { %3347 = vmatprep.mubr.msk.f32.mxu1 %vm40_vm0, %v3670_v5  ;;  %3496 = vmatpush3.bf16.msra.mxu1 %v3493_v61 }
 0x9c7   :  { %3498 = vmatprep.subr.bf16.mxu1 %v3497_v0 }
 0x9ca   :  { %3500 = vmatpush3.bf16.msra.mxu1 %v3497_v0 }
 0x9cb   :  { %3360 = vmatprep.subr.mxu1 %v3600_v14 }
 0x9cd   :  { %3348 = vmatmul.mubr.msk.f32.vlgmr.msra.gmra.mrb[28].mxu1 %vm40_vm0, %v3691_v12 }
 0x9ce   :  { %3362 = vmatprep.mubr.msk.f32.mxu1 %vm3601_vm1, %v3600_v14 }
 0xa8f   :  { %v1888_v47 = vpop.f32.mrb[24].mxu1 }
 0xa90   :  { %v1815_v48 = vpop.f32.mrb[16].mxu0  ;;  %v3311_v49 = vpop.f32.mrb[25].mxu1 }
 0xa91   :  { %v3306_v51 = vpop.f32.mrb[17].mxu0  ;;  %3314 = vmatprep.mubr.msk.f32.mxu0 %vm282_vm2, %v1815_v48  ;;  %v2667_v48 = vld [vmem:[%s4058_s5 + $0x10] sm:$0xff]  ;;  %v2668_v49 = vld [vmem:[%s4058_s5 + $0x18] sm:$0xff] }
 0xa92   :  { %3315 = vmatmul.mubr.msk.f32.vlgmr.msra.gmra.mrb[10].mxu0 %vm282_vm2, %v1888_v47  ;;  %v2759_v51 = vld [vmem:[%s4060_s7] sm:$0xff] }
 0xa93   :  { %3488 = vmatpush3.bf16.msra.mxu0 %v3485_v39  ;;  %3336 = vmatprep.mubr.msk.f32.mxu0 %vm40_vm0, %v3670_v5 }
 0xa94   :  { %3490 = vmatprep.subr.bf16.mxu0 %v3489_v50 }
 0xa97   :  { %3492 = vmatpush3.bf16.msra.mxu0 %v3489_v50  ;;  %v3505_v50 = vpack.c.bf16 %v2668_v49, %v2667_v48 }
 0xa98   :  { %3350 = vmatprep.subr.mxu0 %v3600_v14  ;;  %v3327_v52 = vpop.f32.mrb[26].mxu1 }
 0xa99   :  { %v2048_v53 = vpop.f32.mrb[27].mxu1  ;;  %v2058_v57 = vmul.f32 0.35355338, %v3327_v52  ;;  %v2760_v52 = vld [vmem:[%s4060_s7 + $0x8] sm:$0xff] }
 0xa9a   :  { %3337 = vmatmul.mubr.msk.f32.vlgmr.msra.gmra.mrb[18].mxu0 %vm40_vm0, %v3691_v12  ;;  %v2057_v56 = vmul.f32 0.35355338, %v2048_v53  ;;  %v2761_v53 = vld [vmem:[%s4060_s7 + $0x10] sm:$0xff] }
 0xa9b   :  { %3352 = vmatprep.mubr.msk.f32.mxu0 %vm3601_vm1, %v3600_v14 }
 0xaa0   :  { %v3349_v18 = vpop.f32.mrb[28].mxu1 }
 0xaa1   :  { %v2210_v19 = vpop.f32.mrb[29].mxu1 }
 0xaa2   :  { %3361 = vmatpush3.msra.mxu1 %v2210_v19  ;;  %v2765_v19 = vld [vmem:[%s4060_s7 + $0x30] sm:$0xff] }
 0xb6d   :  { %v3338_v54 = vpop.f32.mrb[18].mxu0 }
 0xb6e   :  { %v2130_v55 = vpop.f32.mrb[19].mxu0 }
 0xb6f   :  { %3351 = vmatpush3.xpose.msk.msra.mxu0 %vm282_vm2, %v2130_v55  ;;  %v2762_v55 = vld [vmem:[%s4060_s7 + $0x18] sm:$0xff] }
 0xb70   :  { %3355 = vmatprep.subr.mxu0 %v3600_v14 }
 0xb72   :  { %3353 = vmatmul.mubr.msk.f32.vlgmr.msra.gmra.mrb[20].mxu0 %vm282_vm2, %v2057_v56  ;;  %v3513_v56 = vpack.c.bf16 %v2762_v55, %v2761_v53 }
 0xb73   :  { %3356 = vmatpush3.xpose.msk.msra.mxu0 %vm282_vm2, %v3338_v54  ;;  %3357 = vmatprep.mubr.msk.f32.mxu0 %vm3601_vm1, %v3600_v14  ;;  %v3509_v54 = vpack.c.bf16 %v2760_v52, %v2759_v51 }
 0xb74   :  { %3365 = vmatprep.subr.mxu0 %v3600_v14 }
 0xb76   :  { %3358 = vmatmul.mubr.msk.f32.vlgmr.msra.gmra.mrb[22].mxu0 %vm282_vm2, %v2058_v57  ;;  %v2763_v57 = vld [vmem:[%s4060_s7 + $0x20] sm:$0xff] }
 0xb77   :  { %3367 = vmatprep.mubr.msk.f32.mxu0 %vm3601_vm1, %v3600_v14  ;;  %3366 = vmatpush3.msra.mxu0 %v3349_v18  ;;  %v3517_v59 = vpack.c.bf16 %v2764_v58, %v2763_v57 }
 0xb78   :  { %3370 = vmatprep.subr.mxu0 %v3003_v26 }
 0xc45   :  { %v2291_v2 = vpop.f32.mrb[20].mxu0 }
 0xc46   :  { %v3354_v3 = vpop.f32.mrb[21].mxu0  ;;  %v2371_v1 = vsel %vm282_vm2, %v2291_v2, -inf }
 0xc47   :  { %2372 = vmax.xlane.f32.xlu0 %v2371_v1 }
 0xc49   :  { %v2367_v4 = vpop.f32.mrb[22].mxu0 }
 0xc4a   :  { %v3359_v6 = vpop.f32.mrb[23].mxu0  ;;  %v2374_v7 = vsel %vm282_vm2, %v2367_v4, -inf }
 0xc4b   :  { %2375 = vmax.xlane.f32.xlu1 %v2374_v7  ;;  %v4013_v7 = vld [vmem:[%s4061_s8] sm:$0x1f] }
 0xcd4   :  { %v2373_v8 = vpop.xlane.xlu0 %2372 }
 0xcd5   :  { %v2377_v63 = vsub.f32 %v2291_v2, %v2373_v8  ;;  %v2653_v2 = vlaneseq }
 0xcd7   :  { %v2379_v9 = vmul.f32 1.442695, %v2377_v63 }
 0xcd8   :  { %v2376_v10 = vpop.xlane.xlu1 %2375 }
 0xcd9   :  { %3560 = vpow2.f32 %v2379_v9  ;;  %v2378_v11 = vsub.f32 %v2367_v4, %v2376_v10  ;;  %v4007_v4 = vshrl.u32 %v2653_v2, 7 }
 0xcdb   :  { %v2381_v13 = vmul.f32 1.442695, %v2378_v11  ;;  %v2655_v6 = vsub.s32 0, %v4007_v4  ;;  %v2661_v8 = vsub.s32 1, %v4007_v4  ;;  %v2883_v53 = vsub.s32 3, %v4007_v4 }
 0xcdd   :  { %3562 = vpow2.f32 %v2381_v13  ;;  %v2656_v63 = vrot.slane %v4013_v7, %v2655_v6  ;;  %v2884_v55 = vrot.slane %v4013_v7, %v2883_v53 }
 0xce3   :  { %v3561_v15 = vpop.eup %3560 }
 0xce4   :  { %v2383_v14 = vsel %vm282_vm2, %v3561_v15, 0.0 }
 0xce5   :  { %2384 = vadd.xlane.f32.xlu0 %v2383_v14 }
 0xce7   :  { %v3563_v16 = vpop.eup %3562 }
 0xce8   :  { %v2386_v17 = vsel %vm282_vm2, %v3563_v16, 0.0 }
 0xce9   :  { %2387 = vadd.xlane.f32.xlu1 %v2386_v17 }
 0xd72   :  { %v2385_v20 = vpop.xlane.xlu0 %2384 }
 0xd73   :  { %3564 = vrcp.f32 %v2385_v20  ;;  %v2766_v20 = vld [vmem:[%s4060_s7 + $0x38] sm:$0xff] }
 0xd76   :  { %v2388_v21 = vpop.xlane.xlu1 %2387 }
 0xd77   :  { %3566 = vrcp.f32 %v2388_v21  ;;  %v3521_v21 = vpack.c.bf16 %v2766_v20, %v2765_v19 }
 0xd7d   :  { %v3565_v22 = vpop.eup %3564 }
 0xd7e   :  { %v2391_v23 = vmul.f32 %v3565_v22, %v3561_v15  ;;  %v2662_v15 = vrot.slane %v4013_v7, %v2661_v8  ;;  %v3006_v22 = vld [vmem:[%s4059_s6] ss:$0 sm:$0xff]  ;;  %s3602_s6 = smov [#allocation2]  }
 0xd7f   :  { %s2900_s7 = sshll.u32 %s3602_s6, 4  ;;  %s2901_s7 = int_to_ptr.vmem [resolvable:$true] %s2900_s7 }
 0xd80   :  { %3363 = vmatmul.mubr.msk.f32.vlgmr.msra.gmra.mrb[30].mxu1 %vm282_vm2, %v2391_v23  ;;  %s3576_s4 = scalar_lea.vmem %s2901_s7, 256  ;;  %p3581_p1 = scmp.lt.s32.totalorder %s2901_s7, %s2901_s7 }
 0xd81   :  { %v3567_v24 = vpop.eup %3566  ;;  %p3577_p0 = scmp.ne.s32.totalorder %s2901_s7, %s3576_s4  ;;  %p3582_p2 = scmp.lt.s32.totalorder %s3576_s4, %s3576_s4 }
 0xd82   :  { %v2392_v25 = vmul.f32 %v3567_v24, %v3563_v16 }
 0xd83   :  { %p3583_p3 = por %p3582_p2, %p3581_p1 }
 0xd84   :  { %3368 = vmatmul.mubr.msk.f32.vlgmr.msra.gmra.mrb[24].mxu0 %vm282_vm2, %v2392_v25 }
 0xd85   :  { %3371 = vmatpush3.msra.mxu0 %v3003_v26  ;;  %p3584_p4 = pnand %p3583_p3, %p3577_p0 }
 0xd86   :  { %3510 = vmatprep.subr.bf16.mxu0 %v3509_v54 }
 0xe53   :  { %v2462_v27 = vpop.f32.mrb[30].mxu1 }
 0xe54   :  { %v3364_v28 = vpop.f32.mrb[31].mxu1  ;;  %3372 = vmatprep.mubr.msk.f32.mxu0 %vm282_vm2, %v2462_v27 }
 0xe57   :  { %v2535_v29 = vpop.f32.mrb[24].mxu0 }
 0xe58   :  { %v3369_v30 = vpop.f32.mrb[25].mxu0  ;;  %3373 = vmatmul.mubr.msk.f32.vlgmr.msra.gmra.mrb[10].mxu0 %vm282_vm2, %v2535_v29  ;;  %v2769_v29 = vsub.s32 2, %v4007_v4 }
 0xe59   :  { %3512 = vmatpush3.bf16.msra.mxu0 %v3509_v54  ;;  %v2889_v54 = vsub.s32 4, %v4007_v4 }
 0xe5a   :  { %3514 = vmatprep.subr.bf16.mxu0 %v3513_v56  ;;  %v2770_v30 = vrot.slane %v4013_v7, %v2769_v29 }
 0xe5d   :  { %3516 = vmatpush3.bf16.msra.mxu0 %v3513_v56 }
 0xe5e   :  { %3518 = vmatprep.subr.bf16.mxu0 %v3517_v59 }
 0xe61   :  { %3520 = vmatpush3.bf16.msra.mxu0 %v3517_v59  ;;  %v2890_v59 = vrot.slane %v4013_v7, %v2889_v54 }
 0xe62   :  { %3522 = vmatprep.subr.bf16.mxu0 %v3521_v21 }
 0xe65   :  { %3524 = vmatpush3.bf16.msra.mxu0 %v3521_v21 }
 0xf2b   :  { %v3374_v31 = vpop.f32.mrb[10].mxu0 }
 0xf2c   :  { %v2625_v32 = vadd.f32 %v3374_v31, %v3691_v12  ;;  %v2613_v33 = vpop.f32.mrb[11].mxu0 }
 0xf2d   :  { %v2624_v34 = vadd.f32 %v2613_v33, %v3670_v5  ;;  %v2665_v5 = vld [vmem:[%s4058_s5] sm:$0xff] }
 0xf2e   :  { %v2629_v35 = vsel %vm40_vm0, %v2625_v32, 0.0  ;;  %v3501_v47 = vpack.c.bf16 %v2666_v46, %v2665_v5 }
 0xf2f   :  { %2630 = vadd.xlane.f32.xlu1 %v2629_v35  ;;  %v2626_v36 = vsel %vm40_vm0, %v2624_v34, 0.0 }
 0xf30   :  { %2627 = vadd.xlane.f32.xlu0 %v2626_v36  ;;  %3502 = vmatprep.subr.bf16.mxu1 %v3501_v47 }
 0xf31   :  { %3504 = vmatpush3.bf16.msra.mxu1 %v3501_v47 }
 0xf32   :  { %3506 = vmatprep.subr.bf16.mxu1 %v3505_v50 }
 0xf35   :  { %3508 = vmatpush3.bf16.msra.mxu1 %v3505_v50 }
 0xfbc   :  { %v2631_v37 = vpop.xlane.xlu1 %2630 }
 0xfbd   :  { %v2634_v38 = vmul.f32 0.03125, %v2631_v37  ;;  %v2628_v39 = vpop.xlane.xlu0 %2627 }
 0xfbe   :  { %v2633_v40 = vmul.f32 0.03125, %v2628_v39 }
 0xfbf   :  { %v2636_v41 = vsub.f32 %v2625_v32, %v2634_v38 }
 0xfc0   :  { %v2635_v42 = vsub.f32 %v2624_v34, %v2633_v40 }
 0xfc1   :  { %v2638_v43 = vmul.f32 %v2636_v41, %v2636_v41 }
 0xfc2   :  { %v2637_v44 = vmul.f32 %v2635_v42, %v2635_v42 }
 0xfc3   :  { %v2642_v45 = vsel %vm40_vm0, %v2638_v43, 0.0 }
 0xfc4   :  { %2643 = vadd.xlane.f32.xlu1 %v2642_v45  ;;  %v2639_v12 = vsel %vm40_vm0, %v2637_v44, 0.0 }
 0xfc5   :  { %2640 = vadd.xlane.f32.xlu0 %v2639_v12 }
0x1051   :  { %v2644_v60 = vpop.xlane.xlu1 %2643 }
0x1052   :  { %v2646_v61 = vmul.f32 0.03125, %v2644_v60  ;;  %v2641_v62 = vpop.xlane.xlu0 %2640 }
0x1053   :  { %v2645_v0 = vmul.f32 0.03125, %v2641_v62 }
0x1054   :  { %v2648_v3 = vadd.f32 1e-06, %v2646_v61 }
0x1055   :  { %v2647_v1 = vadd.f32 1e-06, %v2645_v0 }
0x1056   :  { %3568 = vrsqrt.f32 %v2648_v3 }
0x1057   :  { %3570 = vrsqrt.f32 %v2647_v1 }
0x1060   :  { %v3569_v9 = vpop.eup %3568 }
0x1061   :  { %v3571_v10 = vpop.eup %3570  ;;  %v2652_v11 = vmul.f32 %v3569_v9, %v2636_v41 }
0x1062   :  { %v2651_v13 = vmul.f32 %v3571_v10, %v2635_v42 }
0x1063   :  { %v2658_v14 = vmul.f32 %v2656_v63, %v2652_v11 }
0x1064   :  { %v2657_v16 = vmul.f32 %v2656_v63, %v2651_v13 }
0x1065   :  { %v2664_v18 = vadd.f32 %v2662_v15, %v2658_v14 }
0x1066   :  { %v2663_v17 = vadd.f32 %v2662_v15, %v2657_v16 }
0x1068   :  { %3383 = vmatprep.mubr.msk.f32.mxu1 %vm40_vm0, %v2663_v17 }
0x1069   :  { %3384 = vmatmul.mubr.msk.f32.vlgmr.msra.gmra.mrb[32].mxu1 %vm40_vm0, %v2664_v18 }
0x113c   :  { %v3385_v23 = vpop.f32.mrb[32].mxu1 }
0x113d   :  { %v2754_v24 = vadd.f32 %v3385_v23, %v3006_v22  ;;  %v2748_v25 = vpop.f32.mrb[33].mxu1 }
0x113e   :  { %v2749_v26 = vadd.f32 %v3006_v22, %v2748_v25 }
0x113f   :  { %v2758_v28 = vmax.f32 %v2754_v24, 0.0 }
0x1140   :  { %v2757_v27 = vmax.f32 %v2749_v26, 0.0 }
0x1142   :  { %3402 = vmatprep.mubr.msk.f32.mxu0 %vm2771_vm3, %v2757_v27 }
0x1143   :  { %3403 = vmatmul.mubr.msk.f32.vlgmr.msra.gmra.mrb[26].mxu0 %vm2771_vm3, %v2758_v28 }
0x1216   :  { %v3404_v31 = vpop.f32.mrb[26].mxu0 }
0x1217   :  { %v2850_v32 = vadd.f32 %v3404_v31, %v2770_v30  ;;  %v2844_v33 = vpop.f32.mrb[27].mxu0 }
0x1218   :  { %v2845_v34 = vadd.f32 %v2844_v33, %v2770_v30 }
0x1219   :  { %v2854_v35 = vadd.f32 %v2850_v32, %v2664_v18 }
0x121a   :  { %v2853_v36 = vadd.f32 %v2845_v34, %v2663_v17 }
0x121b   :  { %v2858_v37 = vsel %vm40_vm0, %v2854_v35, 0.0 }
0x121c   :  { %2859 = vadd.xlane.f32.xlu1 %v2858_v37  ;;  %v2855_v38 = vsel %vm40_vm0, %v2853_v36, 0.0 }
0x121d   :  { %2856 = vadd.xlane.f32.xlu0 %v2855_v38 }
0x12a9   :  { %v2860_v39 = vpop.xlane.xlu1 %2859 }
0x12aa   :  { %v2862_v40 = vmul.f32 0.03125, %v2860_v39  ;;  %v2857_v41 = vpop.xlane.xlu0 %2856 }
0x12ab   :  { %v2861_v42 = vmul.f32 0.03125, %v2857_v41 }
0x12ac   :  { %v2864_v43 = vsub.f32 %v2854_v35, %v2862_v40 }
0x12ad   :  { %v2863_v44 = vsub.f32 %v2853_v36, %v2861_v42 }
0x12ae   :  { %v2866_v45 = vmul.f32 %v2864_v43, %v2864_v43 }
0x12af   :  { %v2865_v12 = vmul.f32 %v2863_v44, %v2863_v44 }
0x12b0   :  { %v2870_v5 = vsel %vm40_vm0, %v2866_v45, 0.0 }
0x12b1   :  { %2871 = vadd.xlane.f32.xlu1 %v2870_v5  ;;  %v2867_v46 = vsel %vm40_vm0, %v2865_v12, 0.0 }
0x12b2   :  { %2868 = vadd.xlane.f32.xlu0 %v2867_v46 }
0x133e   :  { %v2872_v47 = vpop.xlane.xlu1 %2871 }
0x133f   :  { %v2874_v48 = vmul.f32 0.03125, %v2872_v47  ;;  %v2869_v49 = vpop.xlane.xlu0 %2868 }
0x1340   :  { %v2873_v50 = vmul.f32 0.03125, %v2869_v49 }
0x1341   :  { %v2876_v51 = vadd.f32 1e-06, %v2874_v48 }
0x1342   :  { %v2875_v52 = vadd.f32 1e-06, %v2873_v50 }
0x1343   :  { %3572 = vrsqrt.f32 %v2876_v51 }
0x1344   :  { %3574 = vrsqrt.f32 %v2875_v52 }
0x134d   :  { %v3573_v56 = vpop.eup %3572 }
0x134e   :  { %v3575_v57 = vpop.eup %3574  ;;  %v2880_v58 = vmul.f32 %v3573_v56, %v2864_v43 }
0x134f   :  { %v2879_v60 = vmul.f32 %v3575_v57, %v2863_v44 }
0x1350   :  { %v2886_v61 = vmul.f32 %v2884_v55, %v2880_v58 }
0x1351   :  { %v2885_v62 = vmul.f32 %v2884_v55, %v2879_v60 }
0x1352   :  { %v2892_v0 = vadd.f32 %v2890_v59, %v2886_v61 }
0x1353   :  { %v2891_v2 = vadd.f32 %v2890_v59, %v2885_v62 }
0x1354   :  { %2894 = vst.msk [vmem:[#allocation2 + $0x8] sm:$0xff] %vm40_vm0, %v2892_v0 }
0x1355   :  { %2893 = vst.msk [vmem:[#allocation2] sm:$0xff] %vm40_vm0, %v2891_v2 }
0x1356   :  { %3587 = shalt.err (!%p3584_p4)
}
0x1357   :  { %s3588_s28 = scalar_lea.hbm %s4062_s9, 256 }
0x1358   :  { %p3589_p5 = scmp.ne.s32.totalorder %s4062_s9, %s3588_s28  ;;  %p3592_p6 = scmp.lt.u32.totalorder %s3588_s28, %s4062_s9 }
0x135a   :  { %p3594_p7 = pnand %p3592_p6, %p3589_p5 }
0x135c   :  { %3597 = shalt.err (!%p3594_p7)
}
0x135d   :  { %s3603_s11 = smov 128   ;;  %s3604_s12 = smov 8  }
0x135e   :  { %2906 = dma.vmem_to_hbm [thread:$0]  %s2901_s7, 256, %s4062_s9, [#allocation3], %s3603_s11, %s3603_s11, %s3604_s12  }
0x135f   :  { %3598 = dma.done.wait [#allocation3], 256  }
0x1360   :  { %3599 = vsyncadd [#allocation3], 4294967040 }
0x1361   :  { %2910 = vsyncpa [#allocation3], 1 }

</bundles_post_ra>
